<compile_context>
chip_gen: v5e
topology: v5e:2x2
jax: 0.10.0
libtpu: 0.0.40
codegen_flags: <defaults>
</compile_context>

<pallas_src>
import numpy as np
import jax
import jax.numpy as jnp
from jax import lax
from jax.experimental import pallas as pl
from jax.experimental.pallas import tpu as pltpu

# ---------------------------------------------------------------- dimensions
C_IN, C_OUT, K = 3, 3, 11
H = W = 32                     # simplerNet requires 32x32 input (75 = 3*5*5)
OH = OW = H - K + 1            # 22 (conv output)
POOL = 4
PH = PW = OH // POOL           # 5  (pool output)
RS = POOL * PH                 # 20 conv rows/cols actually consumed by the pool
ROWBLK = 64                    # 3*20 = 60 conv rows, padded to a sublane multiple
KDIM = C_IN * H                # 96 = contraction dim of the conv matmul (c, h)
FC_OUT = 10
FCBLK = 16                     # 10 FC outputs padded to 16 sublanes
TB = 8                         # batch elements per grid step -> 256 lanes/block

# Static roll-wrap guarantees (feedback correctness concern): every lane pull
# that feeds a consumed output stays inside its own 32-lane batch stripe.
assert (RS - 1) + (K - 1) <= W - 1                 # conv kw taps: 29 <= 31
assert POOL * (PW - 1) + (POOL - 1) <= W - 1       # pool/FC lane window: 19 <= 31
assert C_OUT * RS <= ROWBLK                        # conv rows fit the sublane block
assert (C_OUT - 1) * RS + POOL * (PH - 1) + (POOL - 1) <= C_OUT * RS - 1
assert FC_OUT <= FCBLK and FCBLK % 8 == 0


# ------------------------------------------------------------------- kernel
def _fused_kernel(x_ref, wbig_ref, b1_ref, w2a_ref, b2_ref, sel_ref, out_ref):
    nb = x_ref.shape[1]                     # TB * 32 lanes, columns ordered (b, w)
    x = x_ref[...]                          # (96, nb) bf16

    # Conv as a Horner accumulation over the 11 kernel-column taps:
    #   conv[q, j] = sum_kw (W_kw @ x)[q, j + kw]
    # Only one 64 x nb f32 accumulator is ever live (feedback item 1).
    conv = jnp.dot(wbig_ref[K - 1], x, preferred_element_type=jnp.float32)
    for kw in range(K - 2, -1, -1):
        conv = (jnp.dot(wbig_ref[kw], x, preferred_element_type=jnp.float32)
                + pltpu.roll(conv, nb - 1, axis=1))        # pull from column j+1

    # Conv bias + ReLU (ReLU before max-pool, matching the PyTorch order).
    conv = jnp.maximum(conv + b1_ref[...], 0.0)

    # 4x4 max-pool via the doubling trick: 2 rolls per axis cover offsets 0..3.
    t = jnp.maximum(conv, pltpu.roll(conv, ROWBLK - 1, axis=0))
    rmax = jnp.maximum(t, pltpu.roll(t, ROWBLK - 2, axis=0))
    t = jnp.maximum(rmax, pltpu.roll(rmax, nb - 1, axis=1))
    pmax = jnp.maximum(t, pltpu.roll(t, nb - 2, axis=1))
    # pooled value for (b, o, ph, pw) now sits at row 20*o+4*ph, column 32*b+4*pw

    # FC stage 1: contract over (channel, pooled-row) on the MXU.
    g = jnp.dot(w2a_ref[...], pmax, preferred_element_type=jnp.float32)   # (80, nb)

    # FC stage 2: fold the 5 pooled-column offsets with lane rolls.
    acc = g[0:FCBLK, :]
    for pw in range(1, PW):
        acc = acc + pltpu.roll(g[pw * FCBLK:(pw + 1) * FCBLK, :],
                               nb - POOL * pw, axis=1)

    # Compact the logits in-kernel: select column 32*b for every batch element
    # via a tiny 0/1 matmul -> lane-packed (FCBLK, TB) output block.
    out_ref[...] = (jnp.dot(acc, sel_ref[...], preferred_element_type=jnp.float32)
                    + b2_ref[...])


# --------------------------------------------------------- weight repacking
def pack_params(params, *, tb=TB):
    """Repack module weights once; reuse the result across forward calls."""
    W1, b1, W2, b2 = params
    W1 = jnp.asarray(W1, jnp.float32)
    b1 = jnp.asarray(b1, jnp.float32)
    W2 = jnp.asarray(W2, jnp.float32)
    b2 = jnp.asarray(b2, jnp.float32)

    # Block-Toeplitz conv weights (one (64,96) block per kernel column kw):
    #   wbig[kw, o*20 + r, c*32 + (r + kh)] = W1[o, c, kh, kw]
    kw, o, r, c, kh = np.meshgrid(np.arange(K), np.arange(C_OUT), np.arange(RS),
                                  np.arange(C_IN), np.arange(K), indexing="ij")
    wbig = jnp.zeros((K, ROWBLK, KDIM), jnp.float32)
    wbig = wbig.at[kw, o * RS + r, c * H + r + kh].set(W1[o, c, kh, kw])
    wbig = wbig.astype(jnp.bfloat16)          # bf16 conv weights (feedback item 3)

    # FC weights scattered onto the strided pooled-row positions:
    #   w2a[pw*16 + j, o*20 + 4*ph] = W2[j, o*25 + ph*5 + pw]
    pw, j, o2, ph = np.meshgrid(np.arange(PW), np.arange(FC_OUT),
                                np.arange(C_OUT), np.arange(PH), indexing="ij")
    w2a = jnp.zeros((PW * FCBLK, ROWBLK), jnp.float32)
    w2a = w2a.at[pw * FCBLK + j, o2 * RS + POOL * ph].set(
        W2[j, o2 * PH * PW + ph * PW + pw])

    b1col = jnp.concatenate(
        [jnp.repeat(b1, RS),
         jnp.zeros((ROWBLK - C_OUT * RS,), jnp.float32)]).reshape(ROWBLK, 1)
    b2col = jnp.concatenate(
        [b2, jnp.zeros((FCBLK - FC_OUT,), jnp.float32)]).reshape(FCBLK, 1)

    # 0/1 selection matrix: column 32*b_local of the tile -> output lane b_local.
    sel = jnp.zeros((tb * W, tb), jnp.float32)
    sel = sel.at[np.arange(tb) * W, np.arange(tb)].set(1.0)
    return wbig, b1col, w2a, b2col, sel


# ------------------------------------------------------------------ wrapper
def simpler_net_forward(x, packed, *, tb=TB):
    wbig, b1col, w2a, b2col, sel = packed
    B = x.shape[0]
    # >= 2 grid steps so both v7x TensorCores get work (feedback item 6).
    n_tiles = max(2, int(pl.cdiv(B, tb)))
    bp = n_tiles * tb
    nb = tb * W

    # Single fused pad + transpose + bf16 cast producing the lane-dense layout
    #   xT[c*32 + h, b*32 + w] = x[b, c, h, w]
    # (one read of x, one half-size write; XLA fuses these into one copy).
    # TODO(synk): a fully DMA-lean variant would take NCHW via memory_space=
    # pl.ANY and relayout with strided make_async_copy inside the kernel.
    xpad = jnp.pad(x.astype(jnp.bfloat16), ((0, bp - B), (0, 0), (0, 0), (0, 0)))
    xT = jnp.transpose(xpad, (1, 2, 0, 3)).reshape(KDIM, bp * W)

    out3 = pl.pallas_call(
        _fused_kernel,
        out_shape=jax.ShapeDtypeStruct((n_tiles, FCBLK, tb), jnp.float32),
        grid=(n_tiles,),
        in_specs=[
            pl.BlockSpec((KDIM, nb), lambda i: (0, i)),            # input tile (bf16)
            pl.BlockSpec((K, ROWBLK, KDIM), lambda i: (0, 0, 0)),  # conv weights
            pl.BlockSpec((ROWBLK, 1), lambda i: (0, 0)),           # conv bias
            pl.BlockSpec((PW * FCBLK, ROWBLK), lambda i: (0, 0)),  # fc weights
            pl.BlockSpec((FCBLK, 1), lambda i: (0, 0)),            # fc bias
            pl.BlockSpec((nb, tb), lambda i: (0, 0)),              # logit selector
        ],
        out_specs=pl.BlockSpec((None, FCBLK, tb), lambda i: (i, 0, 0)),
        compiler_params=pltpu.CompilerParams(
            dimension_semantics=("parallel",),       # megacore over batch tiles
            vmem_limit_bytes=16 * 1024 * 1024),      # <1 MiB used; fits every gen
    )(xT, wbig, b1col, w2a, b2col, sel)

    # (n_tiles, 16, tb) -> (B, 10); tiny op on a compact array.
    logits = jnp.transpose(out3, (0, 2, 1)).reshape(bp, FCBLK)
    return logits[:B, :FC_OUT]


# -------------------------------------------------------- reference & init
def _reference_forward(x, params):
    # pure-JAX f32 reference (correctness check only)
    W1, b1, W2, b2 = params
    hp = jax.lax.Precision.HIGHEST
    conv = lax.conv_general_dilated(
        x.astype(jnp.float32), W1, window_strides=(1, 1), padding="VALID",
        dimension_numbers=("NCHW", "OIHW", "NCHW"), precision=hp)
    conv = jnp.maximum(conv + b1.reshape(1, C_OUT, 1, 1), 0.0)
    pooled = lax.reduce_window(
        conv, -jnp.inf, lax.max,
        window_dimensions=(1, 1, POOL, POOL),
        window_strides=(1, 1, POOL, POOL), padding="VALID")
    flat = pooled.reshape(x.shape[0], C_OUT * PH * PW)
    return jnp.dot(flat, W2.T, precision=hp) + b2


def _init_params(key):
    # deterministic synthetic init (PyTorch-style uniform bounds)
    k1, k2, k3, k4 = jax.random.split(key, 4)
    bound1 = 1.0 / np.sqrt(C_IN * K * K)
    bound2 = 1.0 / np.sqrt(C_OUT * PH * PW)
    W1 = jax.random.uniform(k1, (C_OUT, C_IN, K, K), jnp.float32, -bound1, bound1)
    b1 = jax.random.uniform(k2, (C_OUT,), jnp.float32, -bound1, bound1)
    W2 = jax.random.uniform(k3, (FC_OUT, C_OUT * PH * PW), jnp.float32, -bound2, bound2)
    b2 = jax.random.uniform(k4, (FC_OUT,), jnp.float32, -bound2, bound2)
    return W1, b1, W2, b2


if __name__ == "__main__":
    key = jax.random.PRNGKey(0)
    pkey, xkey = jax.random.split(key)
    params = _init_params(pkey)
    packed = pack_params(params)           # packed ONCE, reused (feedback item 9)
    x = jax.random.normal(xkey, (2, C_IN, H, W), jnp.float32)

    fwd = jax.jit(lambda xx: simpler_net_forward(xx, packed))
    out = jax.block_until_ready(fwd(x))

    ref = _reference_forward(x, params)
    # Tolerance covers the deliberate bf16 quantization of the input and conv
    # weights (feedback item 3) plus MXU pass-decomposition differences across
    # TPU generations; with f32 inputs the same kernel meets 2e-3.
    np.testing.assert_allclose(np.asarray(out), np.asarray(ref),
                               rtol=1e-2, atol=1e-2)
    print("KERNEL_OK")
</pallas_src>

<mosaic_0001>
module attributes {stable_mosaic.version = 11 : i64} {
  func.func @_fused_kernel(%arg0: i32, %arg1: memref<96x256xbf16, #tpu.memory_space<vmem>>, %arg2: memref<11x64x96xbf16, #tpu.memory_space<vmem>>, %arg3: memref<64x1xf32, #tpu.memory_space<vmem>>, %arg4: memref<80x64xf32, #tpu.memory_space<vmem>>, %arg5: memref<16x1xf32, #tpu.memory_space<vmem>>, %arg6: memref<256x8xf32, #tpu.memory_space<vmem>>, %arg7: memref<1x16x8xf32, #tpu.memory_space<vmem>>) attributes {dimension_semantics = [#tpu.dimension_semantics<parallel>], iteration_bounds = array<i64: 2>, scalar_prefetch = 0 : i64, scratch_operands = 0 : i64, tpu.core_type = #tpu.core_type<tc>, window_params = [{transform_indices = @transform_0, window_bounds = array<i64: 96, 256>}, {pipeline_mode = #tpu.pipeline_mode<synchronous>, transform_indices = @transform_1, window_bounds = array<i64: 11, 64, 96>}, {pipeline_mode = #tpu.pipeline_mode<synchronous>, transform_indices = @transform_2, window_bounds = array<i64: 64, 1>}, {pipeline_mode = #tpu.pipeline_mode<synchronous>, transform_indices = @transform_3, window_bounds = array<i64: 80, 64>}, {pipeline_mode = #tpu.pipeline_mode<synchronous>, transform_indices = @transform_4, window_bounds = array<i64: 16, 1>}, {pipeline_mode = #tpu.pipeline_mode<synchronous>, transform_indices = @transform_5, window_bounds = array<i64: 256, 8>}, {transform_indices = @transform_6, window_bounds = array<i64: 1, 16, 8>}]} {
    %c0 = arith.constant 0 : index
    %c0_0 = arith.constant 0 : index
    %0 = vector.load %arg1[%c0, %c0_0] : memref<96x256xbf16, #tpu.memory_space<vmem>>, vector<96x256xbf16>
    %c10 = arith.constant 10 : index
    %c0_1 = arith.constant 0 : index
    %c0_2 = arith.constant 0 : index
    %1 = vector.load %arg2[%c10, %c0_1, %c0_2] : memref<11x64x96xbf16, #tpu.memory_space<vmem>>, vector<1x64x96xbf16>
    %2 = vector.shape_cast %1 : vector<1x64x96xbf16> to vector<64x96xbf16>
    %cst = arith.constant dense<0.000000e+00> : vector<64x256xf32>
    %3 = tpu.matmul %2, %0, %cst {dimension_numbers = #tpu.dot_dimension_numbers<[1], [0], [0], [1], [0, 0, 1, 1], [], []>} : vector<64x96xbf16>, vector<96x256xbf16>, vector<64x256xf32> -> vector<64x256xf32>
    %c9 = arith.constant 9 : index
    %c0_3 = arith.constant 0 : index
    %c0_4 = arith.constant 0 : index
    %4 = vector.load %arg2[%c9, %c0_3, %c0_4] : memref<11x64x96xbf16, #tpu.memory_space<vmem>>, vector<1x64x96xbf16>
    %5 = vector.shape_cast %4 : vector<1x64x96xbf16> to vector<64x96xbf16>
    %cst_5 = arith.constant dense<0.000000e+00> : vector<64x256xf32>
    %6 = tpu.matmul %5, %0, %cst_5 {dimension_numbers = #tpu.dot_dimension_numbers<[1], [0], [0], [1], [0, 0, 1, 1], [], []>} : vector<64x96xbf16>, vector<96x256xbf16>, vector<64x256xf32> -> vector<64x256xf32>
    %c255_i32 = arith.constant 255 : i32
    %7 = tpu.dynamic_rotate %3 by %c255_i32 dim 1 : vector<64x256xf32>, i32 -> vector<64x256xf32>
    %8 = arith.addf %6, %7 : vector<64x256xf32>
    %c8 = arith.constant 8 : index
    %c0_6 = arith.constant 0 : index
    %c0_7 = arith.constant 0 : index
    %9 = vector.load %arg2[%c8, %c0_6, %c0_7] : memref<11x64x96xbf16, #tpu.memory_space<vmem>>, vector<1x64x96xbf16>
    %10 = vector.shape_cast %9 : vector<1x64x96xbf16> to vector<64x96xbf16>
    %cst_8 = arith.constant dense<0.000000e+00> : vector<64x256xf32>
    %11 = tpu.matmul %10, %0, %cst_8 {dimension_numbers = #tpu.dot_dimension_numbers<[1], [0], [0], [1], [0, 0, 1, 1], [], []>} : vector<64x96xbf16>, vector<96x256xbf16>, vector<64x256xf32> -> vector<64x256xf32>
    %c255_i32_9 = arith.constant 255 : i32
    %12 = tpu.dynamic_rotate %8 by %c255_i32_9 dim 1 : vector<64x256xf32>, i32 -> vector<64x256xf32>
    %13 = arith.addf %11, %12 : vector<64x256xf32>
    %c7 = arith.constant 7 : index
    %c0_10 = arith.constant 0 : index
    %c0_11 = arith.constant 0 : index
    %14 = vector.load %arg2[%c7, %c0_10, %c0_11] : memref<11x64x96xbf16, #tpu.memory_space<vmem>>, vector<1x64x96xbf16>
    %15 = vector.shape_cast %14 : vector<1x64x96xbf16> to vector<64x96xbf16>
    %cst_12 = arith.constant dense<0.000000e+00> : vector<64x256xf32>
    %16 = tpu.matmul %15, %0, %cst_12 {dimension_numbers = #tpu.dot_dimension_numbers<[1], [0], [0], [1], [0, 0, 1, 1], [], []>} : vector<64x96xbf16>, vector<96x256xbf16>, vector<64x256xf32> -> vector<64x256xf32>
    %c255_i32_13 = arith.constant 255 : i32
    %17 = tpu.dynamic_rotate %13 by %c255_i32_13 dim 1 : vector<64x256xf32>, i32 -> vector<64x256xf32>
    %18 = arith.addf %16, %17 : vector<64x256xf32>
    %c6 = arith.constant 6 : index
    %c0_14 = arith.constant 0 : index
    %c0_15 = arith.constant 0 : index
    %19 = vector.load %arg2[%c6, %c0_14, %c0_15] : memref<11x64x96xbf16, #tpu.memory_space<vmem>>, vector<1x64x96xbf16>
    %20 = vector.shape_cast %19 : vector<1x64x96xbf16> to vector<64x96xbf16>
    %cst_16 = arith.constant dense<0.000000e+00> : vector<64x256xf32>
    %21 = tpu.matmul %20, %0, %cst_16 {dimension_numbers = #tpu.dot_dimension_numbers<[1], [0], [0], [1], [0, 0, 1, 1], [], []>} : vector<64x96xbf16>, vector<96x256xbf16>, vector<64x256xf32> -> vector<64x256xf32>
    %c255_i32_17 = arith.constant 255 : i32
    %22 = tpu.dynamic_rotate %18 by %c255_i32_17 dim 1 : vector<64x256xf32>, i32 -> vector<64x256xf32>
    %23 = arith.addf %21, %22 : vector<64x256xf32>
    %c5 = arith.constant 5 : index
    %c0_18 = arith.constant 0 : index
    %c0_19 = arith.constant 0 : index
    %24 = vector.load %arg2[%c5, %c0_18, %c0_19] : memref<11x64x96xbf16, #tpu.memory_space<vmem>>, vector<1x64x96xbf16>
    %25 = vector.shape_cast %24 : vector<1x64x96xbf16> to vector<64x96xbf16>
    %cst_20 = arith.constant dense<0.000000e+00> : vector<64x256xf32>
    %26 = tpu.matmul %25, %0, %cst_20 {dimension_numbers = #tpu.dot_dimension_numbers<[1], [0], [0], [1], [0, 0, 1, 1], [], []>} : vector<64x96xbf16>, vector<96x256xbf16>, vector<64x256xf32> -> vector<64x256xf32>
    %c255_i32_21 = arith.constant 255 : i32
    %27 = tpu.dynamic_rotate %23 by %c255_i32_21 dim 1 : vector<64x256xf32>, i32 -> vector<64x256xf32>
    %28 = arith.addf %26, %27 : vector<64x256xf32>
    %c4 = arith.constant 4 : index
    %c0_22 = arith.constant 0 : index
    %c0_23 = arith.constant 0 : index
    %29 = vector.load %arg2[%c4, %c0_22, %c0_23] : memref<11x64x96xbf16, #tpu.memory_space<vmem>>, vector<1x64x96xbf16>
    %30 = vector.shape_cast %29 : vector<1x64x96xbf16> to vector<64x96xbf16>
    %cst_24 = arith.constant dense<0.000000e+00> : vector<64x256xf32>
    %31 = tpu.matmul %30, %0, %cst_24 {dimension_numbers = #tpu.dot_dimension_numbers<[1], [0], [0], [1], [0, 0, 1, 1], [], []>} : vector<64x96xbf16>, vector<96x256xbf16>, vector<64x256xf32> -> vector<64x256xf32>
    %c255_i32_25 = arith.constant 255 : i32
    %32 = tpu.dynamic_rotate %28 by %c255_i32_25 dim 1 : vector<64x256xf32>, i32 -> vector<64x256xf32>
    %33 = arith.addf %31, %32 : vector<64x256xf32>
    %c3 = arith.constant 3 : index
    %c0_26 = arith.constant 0 : index
    %c0_27 = arith.constant 0 : index
    %34 = vector.load %arg2[%c3, %c0_26, %c0_27] : memref<11x64x96xbf16, #tpu.memory_space<vmem>>, vector<1x64x96xbf16>
    %35 = vector.shape_cast %34 : vector<1x64x96xbf16> to vector<64x96xbf16>
    %cst_28 = arith.constant dense<0.000000e+00> : vector<64x256xf32>
    %36 = tpu.matmul %35, %0, %cst_28 {dimension_numbers = #tpu.dot_dimension_numbers<[1], [0], [0], [1], [0, 0, 1, 1], [], []>} : vector<64x96xbf16>, vector<96x256xbf16>, vector<64x256xf32> -> vector<64x256xf32>
    %c255_i32_29 = arith.constant 255 : i32
    %37 = tpu.dynamic_rotate %33 by %c255_i32_29 dim 1 : vector<64x256xf32>, i32 -> vector<64x256xf32>
    %38 = arith.addf %36, %37 : vector<64x256xf32>
    %c2 = arith.constant 2 : index
    %c0_30 = arith.constant 0 : index
    %c0_31 = arith.constant 0 : index
    %39 = vector.load %arg2[%c2, %c0_30, %c0_31] : memref<11x64x96xbf16, #tpu.memory_space<vmem>>, vector<1x64x96xbf16>
    %40 = vector.shape_cast %39 : vector<1x64x96xbf16> to vector<64x96xbf16>
    %cst_32 = arith.constant dense<0.000000e+00> : vector<64x256xf32>
    %41 = tpu.matmul %40, %0, %cst_32 {dimension_numbers = #tpu.dot_dimension_numbers<[1], [0], [0], [1], [0, 0, 1, 1], [], []>} : vector<64x96xbf16>, vector<96x256xbf16>, vector<64x256xf32> -> vector<64x256xf32>
    %c255_i32_33 = arith.constant 255 : i32
    %42 = tpu.dynamic_rotate %38 by %c255_i32_33 dim 1 : vector<64x256xf32>, i32 -> vector<64x256xf32>
    %43 = arith.addf %41, %42 : vector<64x256xf32>
    %c1 = arith.constant 1 : index
    %c0_34 = arith.constant 0 : index
    %c0_35 = arith.constant 0 : index
    %44 = vector.load %arg2[%c1, %c0_34, %c0_35] : memref<11x64x96xbf16, #tpu.memory_space<vmem>>, vector<1x64x96xbf16>
    %45 = vector.shape_cast %44 : vector<1x64x96xbf16> to vector<64x96xbf16>
    %cst_36 = arith.constant dense<0.000000e+00> : vector<64x256xf32>
    %46 = tpu.matmul %45, %0, %cst_36 {dimension_numbers = #tpu.dot_dimension_numbers<[1], [0], [0], [1], [0, 0, 1, 1], [], []>} : vector<64x96xbf16>, vector<96x256xbf16>, vector<64x256xf32> -> vector<64x256xf32>
    %c255_i32_37 = arith.constant 255 : i32
    %47 = tpu.dynamic_rotate %43 by %c255_i32_37 dim 1 : vector<64x256xf32>, i32 -> vector<64x256xf32>
    %48 = arith.addf %46, %47 : vector<64x256xf32>
    %c0_38 = arith.constant 0 : index
    %c0_39 = arith.constant 0 : index
    %c0_40 = arith.constant 0 : index
    %49 = vector.load %arg2[%c0_38, %c0_39, %c0_40] : memref<11x64x96xbf16, #tpu.memory_space<vmem>>, vector<1x64x96xbf16>
    %50 = vector.shape_cast %49 : vector<1x64x96xbf16> to vector<64x96xbf16>
    %cst_41 = arith.constant dense<0.000000e+00> : vector<64x256xf32>
    %51 = tpu.matmul %50, %0, %cst_41 {dimension_numbers = #tpu.dot_dimension_numbers<[1], [0], [0], [1], [0, 0, 1, 1], [], []>} : vector<64x96xbf16>, vector<96x256xbf16>, vector<64x256xf32> -> vector<64x256xf32>
    %c255_i32_42 = arith.constant 255 : i32
    %52 = tpu.dynamic_rotate %48 by %c255_i32_42 dim 1 : vector<64x256xf32>, i32 -> vector<64x256xf32>
    %53 = arith.addf %51, %52 : vector<64x256xf32>
    %c0_43 = arith.constant 0 : index
    %c0_44 = arith.constant 0 : index
    %54 = vector.load %arg3[%c0_43, %c0_44] : memref<64x1xf32, #tpu.memory_space<vmem>>, vector<64x1xf32>
    %55 = vector.broadcast %54 : vector<64x1xf32> to vector<64x256xf32>
    %56 = arith.addf %53, %55 : vector<64x256xf32>
    %cst_45 = arith.constant 0.000000e+00 : f32
    %57 = vector.broadcast %cst_45 : f32 to vector<64x256xf32>
    %58 = arith.maximumf %56, %57 : vector<64x256xf32>
    %c63_i32 = arith.constant 63 : i32
    %59 = tpu.dynamic_rotate %58 by %c63_i32 dim 0 : vector<64x256xf32>, i32 -> vector<64x256xf32>
    %60 = arith.maximumf %58, %59 : vector<64x256xf32>
    %c62_i32 = arith.constant 62 : i32
    %61 = tpu.dynamic_rotate %60 by %c62_i32 dim 0 : vector<64x256xf32>, i32 -> vector<64x256xf32>
    %62 = arith.maximumf %60, %61 : vector<64x256xf32>
    %c255_i32_46 = arith.constant 255 : i32
    %63 = tpu.dynamic_rotate %62 by %c255_i32_46 dim 1 : vector<64x256xf32>, i32 -> vector<64x256xf32>
    %64 = arith.maximumf %62, %63 : vector<64x256xf32>
    %c254_i32 = arith.constant 254 : i32
    %65 = tpu.dynamic_rotate %64 by %c254_i32 dim 1 : vector<64x256xf32>, i32 -> vector<64x256xf32>
    %66 = arith.maximumf %64, %65 : vector<64x256xf32>
    %c0_47 = arith.constant 0 : index
    %c0_48 = arith.constant 0 : index
    %67 = vector.load %arg4[%c0_47, %c0_48] : memref<80x64xf32, #tpu.memory_space<vmem>>, vector<80x64xf32>
    %cst_49 = arith.constant dense<0.000000e+00> : vector<80x256xf32>
    %68 = tpu.matmul %67, %66, %cst_49 {dimension_numbers = #tpu.dot_dimension_numbers<[1], [0], [0], [1], [0, 0, 1, 1], [], []>} : vector<80x64xf32>, vector<64x256xf32>, vector<80x256xf32> -> vector<80x256xf32>
    %69 = vector.extract_strided_slice %68 {offsets = [0, 0], sizes = [16, 256], strides = [1, 1]} : vector<80x256xf32> to vector<16x256xf32>
    %70 = vector.extract_strided_slice %68 {offsets = [16, 0], sizes = [16, 256], strides = [1, 1]} : vector<80x256xf32> to vector<16x256xf32>
    %c252_i32 = arith.constant 252 : i32
    %71 = tpu.dynamic_rotate %70 by %c252_i32 dim 1 : vector<16x256xf32>, i32 -> vector<16x256xf32>
    %72 = arith.addf %69, %71 : vector<16x256xf32>
    %73 = vector.extract_strided_slice %68 {offsets = [32, 0], sizes = [16, 256], strides = [1, 1]} : vector<80x256xf32> to vector<16x256xf32>
    %c248_i32 = arith.constant 248 : i32
    %74 = tpu.dynamic_rotate %73 by %c248_i32 dim 1 : vector<16x256xf32>, i32 -> vector<16x256xf32>
    %75 = arith.addf %72, %74 : vector<16x256xf32>
    %76 = vector.extract_strided_slice %68 {offsets = [48, 0], sizes = [16, 256], strides = [1, 1]} : vector<80x256xf32> to vector<16x256xf32>
    %c244_i32 = arith.constant 244 : i32
    %77 = tpu.dynamic_rotate %76 by %c244_i32 dim 1 : vector<16x256xf32>, i32 -> vector<16x256xf32>
    %78 = arith.addf %75, %77 : vector<16x256xf32>
    %79 = vector.extract_strided_slice %68 {offsets = [64, 0], sizes = [16, 256], strides = [1, 1]} : vector<80x256xf32> to vector<16x256xf32>
    %c240_i32 = arith.constant 240 : i32
    %80 = tpu.dynamic_rotate %79 by %c240_i32 dim 1 : vector<16x256xf32>, i32 -> vector<16x256xf32>
    %81 = arith.addf %78, %80 : vector<16x256xf32>
    %c0_50 = arith.constant 0 : index
    %c0_51 = arith.constant 0 : index
    %82 = vector.load %arg6[%c0_50, %c0_51] : memref<256x8xf32, #tpu.memory_space<vmem>>, vector<256x8xf32>
    %cst_52 = arith.constant dense<0.000000e+00> : vector<16x8xf32>
    %83 = tpu.matmul %81, %82, %cst_52 {dimension_numbers = #tpu.dot_dimension_numbers<[1], [0], [0], [1], [0, 0, 1, 1], [], []>} : vector<16x256xf32>, vector<256x8xf32>, vector<16x8xf32> -> vector<16x8xf32>
    %c0_53 = arith.constant 0 : index
    %c0_54 = arith.constant 0 : index
    %84 = vector.load %arg5[%c0_53, %c0_54] : memref<16x1xf32, #tpu.memory_space<vmem>>, vector<16x1xf32>
    %85 = vector.broadcast %84 : vector<16x1xf32> to vector<16x8xf32>
    %86 = arith.addf %83, %85 : vector<16x8xf32>
    %c0_55 = arith.constant 0 : index
    %c0_56 = arith.constant 0 : index
    %c0_57 = arith.constant 0 : index
    %87 = vector.load %arg7[%c0_55, %c0_56, %c0_57] : memref<1x16x8xf32, #tpu.memory_space<vmem>>, vector<1x16x8xf32>
    %88 = vector.shape_cast %87 : vector<1x16x8xf32> to vector<16x8xf32>
    %89 = vector.shape_cast %86 : vector<16x8xf32> to vector<1x16x8xf32>
    tpu.vector_store %arg7[%c0_55, %c0_56, %c0_57], %89 {strides = array<i32>} : memref<1x16x8xf32, #tpu.memory_space<vmem>>, vector<1x16x8xf32>,
    return
  }
  func.func @transform_0(%arg0: i32) -> (i32, i32) {
    %c0_i32 = arith.constant 0 : i32
    %c0_i32_0 = arith.constant 0 : i32
    return %c0_i32, %arg0 : i32, i32
  }
  func.func @transform_1(%arg0: i32) -> (i32, i32, i32) {
    %c0_i32 = arith.constant 0 : i32
    %c0_i32_0 = arith.constant 0 : i32
    %c0_i32_1 = arith.constant 0 : i32
    %c0_i32_2 = arith.constant 0 : i32
    return %c0_i32, %c0_i32_0, %c0_i32_1 : i32, i32, i32
  }
  func.func @transform_2(%arg0: i32) -> (i32, i32) {
    %c0_i32 = arith.constant 0 : i32
    %c0_i32_0 = arith.constant 0 : i32
    %c0_i32_1 = arith.constant 0 : i32
    return %c0_i32, %c0_i32_0 : i32, i32
  }
  func.func @transform_3(%arg0: i32) -> (i32, i32) {
    %c0_i32 = arith.constant 0 : i32
    %c0_i32_0 = arith.constant 0 : i32
    %c0_i32_1 = arith.constant 0 : i32
    return %c0_i32, %c0_i32_0 : i32, i32
  }
  func.func @transform_4(%arg0: i32) -> (i32, i32) {
    %c0_i32 = arith.constant 0 : i32
    %c0_i32_0 = arith.constant 0 : i32
    %c0_i32_1 = arith.constant 0 : i32
    return %c0_i32, %c0_i32_0 : i32, i32
  }
  func.func @transform_5(%arg0: i32) -> (i32, i32) {
    %c0_i32 = arith.constant 0 : i32
    %c0_i32_0 = arith.constant 0 : i32
    %c0_i32_1 = arith.constant 0 : i32
    return %c0_i32, %c0_i32_0 : i32, i32
  }
  func.func @transform_6(%arg0: i32) -> (i32, i32, i32) {
    %c0_i32 = arith.constant 0 : i32
    %c0_i32_0 = arith.constant 0 : i32
    %c0_i32_1 = arith.constant 0 : i32
    return %arg0, %c0_i32, %c0_i32_0 : i32, i32, i32
  }
}

</mosaic_0001>

<bundles_post_ra>
// kernel: _lambda_.1
= control target key start
LH: loop header
LB: loop body
LE: loop exit
PB: predicated region body
PF: predicated region fallthrough
CT: control target
= control target key end

     0   :  { %s3307_s21 = smov 0   ;;  %s3309_s22 = smov 0   ;;  %s4807_s0 = inlined_call_operand.vmem [shape: bf16[96,512], index: 0, kind: input, shape index: {}]   ;;  %s4808_s1 = inlined_call_operand.vmem [shape: bf16[11,64,96], index: 1, kind: input, shape index: {}]   ;;  %s4809_s2 = inlined_call_operand.vmem [shape: f32[64,1], index: 2, kind: input, shape index: {}]   ;;  %s4810_s3 = inlined_call_operand.vmem [shape: f32[80,64], index: 3, kind: input, shape index: {}]   ;;  %s4811_s4 = inlined_call_operand.vmem [shape: f32[16,1], index: 4, kind: input, shape index: {}]   ;;  %s4812_s5 = inlined_call_operand.vmem [shape: f32[256,8], index: 5, kind: input, shape index: {}]   ;;  %s4813_s6 = inlined_call_operand.vmem [shape: f32[2,16,8], index: 6, kind: output, shape index: {}]  }
   0x1   :  { %s3311_s23 = smov 0  }
   0x2 LB: > { %s2644_s24 = sadd.s32 4294967295, %s3263_s23   ;;  %s3324_s25 = sadd.s32 1, %s3263_s23   ;;  %s3263_s23 = sphi %s3311_s23, %s4816_s23   ;;  %s3259_s22 = sphi %s3309_s22, %s4815_s22   ;;  %s3255_s21 = sphi %s3307_s21, %s4814_s21  }
   0x3   : > { %s20_s26 = ssub.s32 %s3263_s23, %s3324_s25  ;;  %s23_s27 = sadd.s32 1, %s3259_s22 }
   0x4   : > { %p21_p0 = scmp.eq.s32.totalorder %s20_s26, 0  ;;  %p30_p1 = scmp.ne.s32.totalorder %s3259_s22, %s3255_s21 }
   0x5   : > { %p31_p2 = scmp.eq.s32.totalorder %s3263_s23, 0  ;;  %p2647_p4 = scmp.ge.s32.totalorder %s3263_s23, 2 }
   0x6   : > { %s3333_s28 = scalar_select %p21_p0, %s3259_s22, %s23_s27  }
   0x7   : > { %p32_p3 = por %p31_p2, %p30_p1  ;;  %202 = sbr.rel (%p2647_p4) target bundleno = 28 (0x1c), region = 36 }
   0xc   : > { %205 = sbr.rel (!%p32_p3) target bundleno = 28 (0x1c), region = 40  ;;  %s207_s29 = sand.u32 (%p32_p3), 1, %s3259_s22  }
   0xd   : > { %s3067_s30 = sshll.u32 (%p32_p3), %s3263_s23, 3  ;;  %s3125_s7 = smul.u32 (%p32_p3), 96, %s207_s29 }
   0xe   : > { %s212_s10 = scalar_lea.vmem (%p32_p3), %s4807_s0, %s3067_s30 }
   0xf   : > { %v263_v0 = vld [vmem:[%s212_s10] sm:$0xff] (%p32_p3)  ;;  %v265_v1 = vld [vmem:[%s212_s10 + $0x10] sm:$0xff] (%p32_p3)  ;;  %s209_s11 = scalar_lea.vmem (%p32_p3), [#allocation2], %s3125_s7 }
  0x10   : > { %v267_v2 = vld [vmem:[%s212_s10 + $0x20] sm:$0xff] (%p32_p3)  ;;  %264 = vst [vmem:[%s209_s11] sm:$0xff] (%p32_p3), %v263_v0  ;;  %v269_v3 = vld [vmem:[%s212_s10 + $0x30] sm:$0xff] (%p32_p3) }
  0x11   : > { %266 = vst [vmem:[%s209_s11 + $0x8] sm:$0xff] %v265_v1  ;;  %v271_v4 = vld [vmem:[%s212_s10 + $0x40] sm:$0xff]  ;;  %v273_v5 = vld [vmem:[%s212_s10 + $0x50] sm:$0xff] }
  0x12   : > { %268 = vst [vmem:[%s209_s11 + $0x10] sm:$0xff] %v267_v2  ;;  %v275_v6 = vld [vmem:[%s212_s10 + $0x60] sm:$0xff]  ;;  %v277_v7 = vld [vmem:[%s212_s10 + $0x70] sm:$0xff] }
  0x13   : > { %270 = vst [vmem:[%s209_s11 + $0x18] sm:$0xff] %v269_v3  ;;  %v279_v8 = vld [vmem:[%s212_s10 + $0x80] sm:$0xff]  ;;  %v281_v9 = vld [vmem:[%s212_s10 + $0x90] sm:$0xff] }
  0x14   : > { %272 = vst [vmem:[%s209_s11 + $0x20] sm:$0xff] %v271_v4  ;;  %v283_v10 = vld [vmem:[%s212_s10 + $0xa0] sm:$0xff]  ;;  %v285_v11 = vld [vmem:[%s212_s10 + $0xb0] sm:$0xff] }
  0x15   : > { %274 = vst [vmem:[%s209_s11 + $0x28] sm:$0xff] %v273_v5 }
  0x16   : > { %276 = vst [vmem:[%s209_s11 + $0x30] sm:$0xff] %v275_v6 }
  0x17   : > { %278 = vst [vmem:[%s209_s11 + $0x38] sm:$0xff] %v277_v7 }
  0x18   : > { %280 = vst [vmem:[%s209_s11 + $0x40] sm:$0xff] %v279_v8 }
  0x19   : > { %282 = vst [vmem:[%s209_s11 + $0x48] sm:$0xff] %v281_v9 }
  0x1a   : > { %284 = vst [vmem:[%s209_s11 + $0x50] sm:$0xff] %v283_v10 }
  0x1b   : > { %286 = vst [vmem:[%s209_s11 + $0x58] sm:$0xff] %v285_v11 }
  0x1c PF: > { %p2650_p5 = scmp.ge.s32.totalorder %s3263_s23, 1  ;;  %p291_p6 = scmp.lt.s32.totalorder %s3263_s23, 3 }
  0x1e   : > { %p292_p7 = pnand %p2650_p5, %p291_p6 }
  0x1f   : > { %s298_s12 = sand.u32 (!%p292_p7), 1, %s3255_s21   ;;  %s3267_s10 = smov (!%p292_p7), 126  }
  0x20   : > { %295 = sbr.rel (%p292_p7) target bundleno = 2162 (0x872), region = 78  ;;  %s3268_s11 = smov (!%p292_p7), 124  }
  0x21   : > { %s3126_s13 = smul.u32 (!%p292_p7), 96, %s298_s12  ;;  %s3269_s12 = smov (!%p292_p7), 120  }
  0x22   : > { %s3271_s15 = smov (!%p292_p7), 112   ;;  %p328_p8 = scmp.lt.s32.totalorder (!%p292_p7), %s2644_s24, 1 }
  0x23   : > { %s3344_s14 = scalar_lea.vmem (!%p292_p7), [#allocation2], %s3126_s13  ;;  %s3270_s13 = smov (!%p292_p7), 116  }
  0x25   : > { %v2719_v12 = vld [vmem:[%s3344_s14 + $0x50] sm:$0xf]  ;;  %v3080_v13 = vld [vmem:[%s3344_s14 + $0x54] sm:$0xf0]  ;;  %v3079_v14 = vld [vmem:[%s3344_s14 + $0x54] sm:$0xf] }
  0x26   : > { %v3349_v15 = vor.u32 %v3080_v13, %v2719_v12  ;;  %v2721_v16 = vld [vmem:[%s3344_s14 + $0x58] sm:$0xf0]  ;;  %v2711_v17 = vld [vmem:[%s3344_s14 + $0x40] sm:$0xf]  ;;  %v3078_v18 = vld [vmem:[%s3344_s14 + $0x44] sm:$0xf0] }
  0x27   : > { %v3354_v19 = vor.u32 %v3079_v14, %v2721_v16  ;;  %v3077_v20 = vld [vmem:[%s3344_s14 + $0x44] sm:$0xf]  ;;  %v2713_v21 = vld [vmem:[%s3344_s14 + $0x48] sm:$0xf0]  ;;  %v3359_v22 = vor.u32 %v3078_v18, %v2711_v17  ;;  %v2703_v24 = vld [vmem:[%s3344_s14 + $0x30] sm:$0xf]  ;;  %v547_v14 = vlaneseq }
  0x28   : > { %450 = vmatpush.bf16.msra.mxu0 %v3349_v15  ;;  %600 = vmatpush.bf16.msra.mxu2 %v3349_v15  ;;  %v3363_v23 = vor.u32 %v3077_v20, %v2713_v21  ;;  %v3076_v25 = vld [vmem:[%s3344_s14 + $0x34] sm:$0xf0]  ;;  %v3075_v26 = vld [vmem:[%s3344_s14 + $0x34] sm:$0xf]  ;;  %v2705_v27 = vld [vmem:[%s3344_s14 + $0x38] sm:$0xf0] }
  0x29   : > { %479 = vmatpush.bf16.msra.mxu1 %v3354_v19  ;;  %629 = vmatpush.bf16.msra.mxu3 %v3354_v19  ;;  %v3371_v28 = vor.u32 %v3076_v25, %v2703_v24  ;;  %v3375_v29 = vor.u32 %v3075_v26, %v2705_v27  ;;  %v2695_v30 = vld [vmem:[%s3344_s14 + $0x20] sm:$0xf]  ;;  %v3074_v31 = vld [vmem:[%s3344_s14 + $0x24] sm:$0xf0]  ;;  %v3073_v32 = vld [vmem:[%s3344_s14 + $0x24] sm:$0xf] }
  0x2a   : > { %v2697_v33 = vld [vmem:[%s3344_s14 + $0x28] sm:$0xf0]  ;;  %v3383_v34 = vor.u32 %v3074_v31, %v2695_v30  ;;  %v2687_v36 = vld [vmem:[%s3344_s14 + $0x10] sm:$0xf]  ;;  %v3072_v37 = vld [vmem:[%s3344_s14 + $0x14] sm:$0xf0] }
  0x2b   : > { %v3387_v35 = vor.u32 %v3073_v32, %v2697_v33  ;;  %v3071_v38 = vld [vmem:[%s3344_s14 + $0x14] sm:$0xf]  ;;  %v2689_v39 = vld [vmem:[%s3344_s14 + $0x18] sm:$0xf0]  ;;  %v3395_v40 = vor.u32 %v3072_v37, %v2687_v36  ;;  %v2679_v42 = vld [vmem:[%s3344_s14] sm:$0xf] }
  0x2c   : > { %451 = vmatpush.bf16.msra.mxu0 %v3359_v22  ;;  %601 = vmatpush.bf16.msra.mxu2 %v3359_v22  ;;  %v3399_v41 = vor.u32 %v3071_v38, %v2689_v39  ;;  %v3070_v43 = vld [vmem:[%s3344_s14 + $0x4] sm:$0xf0]  ;;  %v3069_v44 = vld [vmem:[%s3344_s14 + $0x4] sm:$0xf]  ;;  %v2681_v45 = vld [vmem:[%s3344_s14 + $0x8] sm:$0xf0] }
  0x2d   : > { %480 = vmatpush.bf16.msra.mxu1 %v3363_v23  ;;  %630 = vmatpush.bf16.msra.mxu3 %v3363_v23  ;;  %v3407_v46 = vor.u32 %v3070_v43, %v2679_v42  ;;  %v3411_v47 = vor.u32 %v3069_v44, %v2681_v45  ;;  %v3081_v48 = vld [vmem:[%s4808_s1 + $0x140] sm:$0xff]  ;;  %vm435_vm0 = vcmask 785408   ;;  %v3082_v49 = vld [vmem:[%s4808_s1 + $0x148] sm:$0xff]  ;;  %v3265_v51 = vmov 0   ;;  %v3083_v52 = vld [vmem:[%s4808_s1 + $0x150] sm:$0xff]  ;;  %s3266_s14 = smov 127  }
  0x2e   : > { %v3085_v50 = vld [vmem:[%s4808_s1 + $0x120] sm:$0xff]  ;;  %3158 = vset.pattern.permute.xlu2 %v3265_v51  ;;  %3159 = vset.pattern.permute.xlu0 %v3265_v51  ;;  %v3086_v53 = vld [vmem:[%s4808_s1 + $0x128] sm:$0xff]  ;;  %v3084_v54 = vld [vmem:[%s4808_s1 + $0x158] sm:$0xff]  ;;  %v3551_v17 = vand.u32 127, %v547_v14  ;;  %vm2297_vm5 = vcmask 523264   ;;  %s4818_s24 = smov (!%p328_p8, %s2644_s24), 1 }
  0x2f   : > { %3160 = vset.pattern.permute.xlu1 %v3265_v51  ;;  %v1978_v55 = vld [vmem:[%s4809_s2] sm:$0xff]  ;;  %v3087_v56 = vld [vmem:[%s4808_s1 + $0x130] sm:$0xff]  ;;  %v3088_v57 = vld [vmem:[%s4808_s1 + $0x138] sm:$0xff]  ;;  %s3068_s8 = sshll.u32 %s4818_s24, 4  ;;  %vm2580_vm10 = vcmask 64512  }
  0x30   : > { %452 = vmatpush.bf16.msra.mxu0 %v3371_v28  ;;  %602 = vmatpush.bf16.msra.mxu2 %v3371_v28  ;;  %v3089_v2 = vld [vmem:[%s4808_s1 + $0x100] sm:$0xff]  ;;  %v3090_v11 = vld [vmem:[%s4808_s1 + $0x108] sm:$0xff]  ;;  %v3091_v16 = vld [vmem:[%s4808_s1 + $0x110] sm:$0xff]  ;;  %vm549_vm1 = vcmp.lt.s32.totalorder %v3551_v17, 127  ;;  %vm2254_vm4 = vcmp.lt.s32.totalorder %v3551_v17, 126  ;;  %vm2430_vm6 = vcmp.lt.s32.totalorder %v3551_v17, 124 }
  0x31   : > { %481 = vmatpush.bf16.msra.mxu1 %v3375_v29  ;;  %631 = vmatpush.bf16.msra.mxu3 %v3375_v29  ;;  %v3092_v38 = vld [vmem:[%s4808_s1 + $0x118] sm:$0xff]  ;;  %vm2447_vm7 = vcmp.lt.s32.totalorder %v3551_v17, 120  ;;  %vm2464_vm8 = vcmp.lt.s32.totalorder %v3551_v17, 116  ;;  %vm2481_vm9 = vcmp.lt.s32.totalorder %v3551_v17, 112 }
  0x32   : > { %1988 = vperm.xlu2 %3158, %v1978_v55  }
  0x34   : > { %453 = vmatpush.bf16.msra.mxu0 %v3383_v34  ;;  %603 = vmatpush.bf16.msra.mxu2 %v3383_v34 }
  0x35   : > { %482 = vmatpush.bf16.msra.mxu1 %v3387_v35  ;;  %632 = vmatpush.bf16.msra.mxu3 %v3387_v35 }
  0x38   : > { %454 = vmatpush.bf16.msra.mxu0 %v3395_v40  ;;  %604 = vmatpush.bf16.msra.mxu2 %v3395_v40 }
  0x39   : > { %483 = vmatpush.bf16.msra.mxu1 %v3399_v41  ;;  %633 = vmatpush.bf16.msra.mxu3 %v3399_v41 }
  0x3c   : > { %455 = vmatpush.bf16.msra.mxu0 %v3407_v46  ;;  %605 = vmatpush.bf16.msra.mxu2 %v3407_v46 }
  0x3d   : > { %484 = vmatpush.bf16.msra.mxu1 %v3411_v47  ;;  %634 = vmatpush.bf16.msra.mxu3 %v3411_v47 }
  0x3f   : > { %2725 = vmatmul.msk.bf16.vlgmr.msra.gmra.mxu0 %vm435_vm0, %v3081_v48  ;;  %2757 = vmatmul.msk.bf16.vlgmr.msra.gmra.mxu2 %vm435_vm0, %v3085_v50 }
  0x40   : > { %747 = vmatpush.bf16.msrb.mxu0 %v3349_v15  ;;  %894 = vmatpush.bf16.msrb.mxu2 %v3349_v15 }
  0x41   : > { %776 = vmatpush.bf16.msrb.mxu1 %v3354_v19  ;;  %923 = vmatpush.bf16.msrb.mxu3 %v3354_v19 }
  0x42   : > { %2729 = vmatmul.msk.bf16.vlgmr.msra.gmra.mxu1 %vm435_vm0, %v3081_v48  ;;  %2761 = vmatmul.msk.bf16.vlgmr.msra.gmra.mxu3 %vm435_vm0, %v3085_v50 }
  0x44   : > { %748 = vmatpush.bf16.msrb.mxu0 %v3359_v22  ;;  %895 = vmatpush.bf16.msrb.mxu2 %v3359_v22 }
  0x45   : > { %777 = vmatpush.bf16.msrb.mxu1 %v3363_v23  ;;  %924 = vmatpush.bf16.msrb.mxu3 %v3363_v23 }
  0x48   : > { %749 = vmatpush.bf16.msrb.mxu0 %v3371_v28  ;;  %896 = vmatpush.bf16.msrb.mxu2 %v3371_v28 }
  0x49   : > { %778 = vmatpush.bf16.msrb.mxu1 %v3375_v29  ;;  %925 = vmatpush.bf16.msrb.mxu3 %v3375_v29 }
  0x4c   : > { %750 = vmatpush.bf16.msrb.mxu0 %v3383_v34  ;;  %897 = vmatpush.bf16.msrb.mxu2 %v3383_v34 }
  0x4d   : > { %779 = vmatpush.bf16.msrb.mxu1 %v3387_v35  ;;  %926 = vmatpush.bf16.msrb.mxu3 %v3387_v35 }
  0x4f   : > { %2726 = vmatmul.msk.bf16.gmra.mxu0 %vm435_vm0, %v3082_v49  ;;  %2758 = vmatmul.msk.bf16.gmra.mxu2 %vm435_vm0, %v3086_v53 }
  0x50   : > { %751 = vmatpush.bf16.msrb.mxu0 %v3395_v40  ;;  %898 = vmatpush.bf16.msrb.mxu2 %v3395_v40 }
  0x51   : > { %780 = vmatpush.bf16.msrb.mxu1 %v3399_v41  ;;  %927 = vmatpush.bf16.msrb.mxu3 %v3399_v41 }
  0x52   : > { %2730 = vmatmul.msk.bf16.gmra.mxu1 %vm435_vm0, %v3082_v49  ;;  %2762 = vmatmul.msk.bf16.gmra.mxu3 %vm435_vm0, %v3086_v53 }
  0x54   : > { %752 = vmatpush.bf16.msrb.mxu0 %v3407_v46  ;;  %899 = vmatpush.bf16.msrb.mxu2 %v3407_v46 }
  0x55   : > { %781 = vmatpush.bf16.msrb.mxu1 %v3411_v47  ;;  %928 = vmatpush.bf16.msrb.mxu3 %v3411_v47 }
  0x58   : > { %1041 = vmatpush.bf16.msra.mxu0 %v3349_v15  ;;  %1188 = vmatpush.bf16.msra.mxu2 %v3349_v15 }
  0x59   : > { %1070 = vmatpush.bf16.msra.mxu1 %v3354_v19  ;;  %1217 = vmatpush.bf16.msra.mxu3 %v3354_v19 }
  0x5c   : > { %1042 = vmatpush.bf16.msra.mxu0 %v3359_v22  ;;  %1189 = vmatpush.bf16.msra.mxu2 %v3359_v22 }
  0x5d   : > { %1071 = vmatpush.bf16.msra.mxu1 %v3363_v23  ;;  %1218 = vmatpush.bf16.msra.mxu3 %v3363_v23 }
  0x5f   : > { %2727 = vmatmul.msk.bf16.gmra.mxu0 %vm435_vm0, %v3083_v52  ;;  %2759 = vmatmul.msk.bf16.gmra.mxu2 %vm435_vm0, %v3087_v56 }
  0x60   : > { %1043 = vmatpush.bf16.msra.mxu0 %v3371_v28  ;;  %1190 = vmatpush.bf16.msra.mxu2 %v3371_v28 }
  0x61   : > { %1072 = vmatpush.bf16.msra.mxu1 %v3375_v29  ;;  %1219 = vmatpush.bf16.msra.mxu3 %v3375_v29 }
  0x62   : > { %2731 = vmatmul.msk.bf16.gmra.mxu1 %vm435_vm0, %v3083_v52  ;;  %2763 = vmatmul.msk.bf16.gmra.mxu3 %vm435_vm0, %v3087_v56 }
  0x64   : > { %1044 = vmatpush.bf16.msra.mxu0 %v3383_v34  ;;  %1191 = vmatpush.bf16.msra.mxu2 %v3383_v34 }
  0x65   : > { %1073 = vmatpush.bf16.msra.mxu1 %v3387_v35  ;;  %1220 = vmatpush.bf16.msra.mxu3 %v3387_v35 }
  0x68   : > { %1045 = vmatpush.bf16.msra.mxu0 %v3395_v40  ;;  %1192 = vmatpush.bf16.msra.mxu2 %v3395_v40 }
  0x69   : > { %1074 = vmatpush.bf16.msra.mxu1 %v3399_v41  ;;  %1221 = vmatpush.bf16.msra.mxu3 %v3399_v41 }
  0x6c   : > { %1046 = vmatpush.bf16.msra.mxu0 %v3407_v46  ;;  %1193 = vmatpush.bf16.msra.mxu2 %v3407_v46 }
  0x6d   : > { %1075 = vmatpush.bf16.msra.mxu1 %v3411_v47  ;;  %1222 = vmatpush.bf16.msra.mxu3 %v3411_v47 }
  0x6f   : > { %2728 = vmatmul.msk.bf16.gmra.mxu0 %vm435_vm0, %v3084_v54  ;;  %2760 = vmatmul.msk.bf16.gmra.mxu2 %vm435_vm0, %v3088_v57 }
  0x72   : > { %2732 = vmatmul.msk.bf16.gmra.mxu1 %vm435_vm0, %v3084_v54  ;;  %2764 = vmatmul.msk.bf16.gmra.mxu3 %vm435_vm0, %v3088_v57 }
  0x7f   : > { %2789 = vmatmul.msk.bf16.vlgmr.msrb.gmra.mxu0 %vm435_vm0, %v3089_v2 }
  0x80   : > { %1335 = vmatpush.bf16.msrb.mxu0 %v3349_v15 }
  0x82   : > { %2793 = vmatmul.msk.bf16.vlgmr.msrb.gmra.mxu1 %vm435_vm0, %v3089_v2 }
  0x83   : > { %1364 = vmatpush.bf16.msrb.mxu1 %v3354_v19 }
  0x84   : > { %1336 = vmatpush.bf16.msrb.mxu0 %v3359_v22 }
  0x87   : > { %1365 = vmatpush.bf16.msrb.mxu1 %v3363_v23 }
  0x88   : > { %1337 = vmatpush.bf16.msrb.mxu0 %v3371_v28 }
  0x8b   : > { %1366 = vmatpush.bf16.msrb.mxu1 %v3375_v29 }
  0x8c   : > { %1338 = vmatpush.bf16.msrb.mxu0 %v3383_v34  ;;  %v3555_v18 = vpop.permute.xlu2 %1988 }
  0x8f   : > { %1367 = vmatpush.bf16.msrb.mxu1 %v3387_v35  ;;  %2790 = vmatmul.msk.bf16.gmra.mxu0 %vm435_vm0, %v3090_v11 }
  0x90   : > { %1339 = vmatpush.bf16.msrb.mxu0 %v3395_v40 }
  0x92   : > { %2794 = vmatmul.msk.bf16.gmra.mxu1 %vm435_vm0, %v3090_v11 }
  0x93   : > { %1368 = vmatpush.bf16.msrb.mxu1 %v3399_v41 }
  0x94   : > { %1340 = vmatpush.bf16.msrb.mxu0 %v3407_v46 }
  0x97   : > { %1369 = vmatpush.bf16.msrb.mxu1 %v3411_v47 }
  0x9f   : > { %2791 = vmatmul.msk.bf16.gmra.mxu0 %vm435_vm0, %v3091_v16 }
  0xa2   : > { %2795 = vmatmul.msk.bf16.gmra.mxu1 %vm435_vm0, %v3091_v16 }
  0xaf   : > { %2792 = vmatmul.msk.bf16.gmra.mxu0 %vm435_vm0, %v3092_v38 }
  0xb2   : > { %2796 = vmatmul.msk.bf16.gmra.mxu1 %vm435_vm0, %v3092_v38 }
  0xbc   : > { %v457_v58 = vpop.f32.mrf.mxu0 }
  0xbd   : > { %515 = vrot.lane.b32.xlu0 %v457_v58, %s3266_s14 }
  0xbf   : > { %v486_v59 = vpop.f32.mrf.mxu1 }
  0xc0   : > { %531 = vrot.lane.b32.xlu1 %v486_v59, %s3266_s14 }
  0xc2   : > { %v607_v12 = vpop.f32.mrf.mxu2 }
  0xc4   : > { %v459_v60 = vpop.f32.mrf.mxu0 }
  0xc5   : > { %517 = vrot.lane.b32.xlu0 %v459_v60, %s3266_s14  ;;  %v636_v13 = vpop.f32.mrf.mxu3 }
  0xc7   : > { %v488_v61 = vpop.f32.mrf.mxu1 }
  0xc8   : > { %533 = vrot.lane.b32.xlu2 %v488_v61, %s3266_s14 }
  0xca   : > { %v609_v20 = vpop.f32.mrf.mxu2 }
  0xcc   : > { %v462_v62 = vpop.f32.mrf.mxu0 }
  0xcd   : > { %v638_v21 = vpop.f32.mrf.mxu3 }
  0xcf   : > { %v491_v63 = vpop.f32.mrf.mxu1 }
  0xd0   : > { %519 = vrot.lane.b32.xlu2 %v462_v62, %s3266_s14  ;;  %535 = vrot.lane.b32.xlu0 %v491_v63, %s3266_s14 }
  0xd2   : > { %v612_v31 = vpop.f32.mrf.mxu2 }
  0xd4   : > { %v464_v0 = vpop.f32.mrf.mxu0 }
  0xd5   : > { %v641_v36 = vpop.f32.mrf.mxu3 }
  0xd7   : > { %v493_v1 = vpop.f32.mrf.mxu1 }
  0xd8   : > { %521 = vrot.lane.b32.xlu0 %v464_v0, %s3266_s14  ;;  %537 = vrot.lane.b32.xlu1 %v493_v1, %s3266_s14 }
  0xda   : > { %v614_v50 = vpop.f32.mrf.mxu2 }
  0xdc   : > { %v467_v3 = vpop.f32.mrf.mxu0 }
  0xdd   : > { %v643_v52 = vpop.f32.mrf.mxu3 }
  0xdf   : > { %v496_v4 = vpop.f32.mrf.mxu1 }
  0xe0   : > { %523 = vrot.lane.b32.xlu1 %v467_v3, %s3266_s14  ;;  %539 = vrot.lane.b32.xlu2 %v496_v4, %s3266_s14 }
  0xe2   : > { %v617_v61 = vpop.f32.mrf.mxu2 }
  0xe4   : > { %v469_v5 = vpop.f32.mrf.mxu0 }
  0xe5   : > { %v646_v62 = vpop.f32.mrf.mxu3 }
  0xe7   : > { %v498_v6 = vpop.f32.mrf.mxu1 }
  0xe8   : > { %525 = vrot.lane.b32.xlu2 %v469_v5, %s3266_s14  ;;  %541 = vrot.lane.b32.xlu0 %v498_v6, %s3266_s14  ;;  %v3093_v5 = vld [vmem:[%s4808_s1 + $0xe0] sm:$0xff] }
  0xe9   : > { %2821 = vmatmul.msk.bf16.vlgmr.msrb.gmra.mxu2 %vm435_vm0, %v3093_v5  ;;  %2825 = vmatmul.msk.bf16.vlgmr.msrb.gmra.mxu3 %vm435_vm0, %v3093_v5 }
  0xea   : > { %v619_v6 = vpop.f32.mrf.mxu2  ;;  %1482 = vmatpush.bf16.msrb.mxu2 %v3349_v15  ;;  %1511 = vmatpush.bf16.msrb.mxu3 %v3354_v19 }
  0xec   : > { %v472_v7 = vpop.f32.mrf.mxu0 }
  0xee   : > { %1483 = vmatpush.bf16.msrb.mxu2 %v3359_v22  ;;  %1512 = vmatpush.bf16.msrb.mxu3 %v3363_v23 }
  0xef   : > { %v501_v8 = vpop.f32.mrf.mxu1 }
  0xf0   : > { %527 = vrot.lane.b32.xlu0 %v472_v7, %s3266_s14  ;;  %543 = vrot.lane.b32.xlu1 %v501_v8, %s3266_s14  ;;  %v648_v7 = vpop.f32.mrf.mxu3 }
  0xf2   : > { %v622_v16 = vpop.f32.mrf.mxu2  ;;  %1484 = vmatpush.bf16.msrb.mxu2 %v3371_v28  ;;  %1513 = vmatpush.bf16.msrb.mxu3 %v3375_v29 }
  0xf4   : > { %v474_v9 = vpop.f32.mrf.mxu0 }
  0xf6   : > { %1485 = vmatpush.bf16.msrb.mxu2 %v3383_v34  ;;  %1514 = vmatpush.bf16.msrb.mxu3 %v3387_v35 }
  0xf7   : > { %v503_v10 = vpop.f32.mrf.mxu1 }
  0xf8   : > { %529 = vrot.lane.b32.xlu1 %v474_v9, %s3266_s14  ;;  %545 = vrot.lane.b32.xlu2 %v503_v10, %s3266_s14 }
  0xfa   : > { %1486 = vmatpush.bf16.msrb.mxu2 %v3395_v40  ;;  %1515 = vmatpush.bf16.msrb.mxu3 %v3399_v41 }
  0xfe   : > { %1487 = vmatpush.bf16.msrb.mxu2 %v3407_v46  ;;  %1516 = vmatpush.bf16.msrb.mxu3 %v3411_v47 }
 0x122   : > { %v534_v30 = vpop.permute.xlu2 %533 }
 0x12a   : > { %v520_v44 = vpop.permute.xlu2 %519 }
 0x12f   : > { %v516_v24 = vpop.permute.xlu0 %515 }
 0x132   : > { %v532_v25 = vpop.permute.xlu1 %531 }
 0x133   : > { %v550_v26 = vsel %vm549_vm1, %v516_v24, %v532_v25  ;;  %v558_v32 = vsel %vm549_vm1, %v532_v25, %v516_v24 }
 0x134   : > { %v608_v27 = vadd.f32 %v607_v12, %v550_v26  ;;  %v637_v42 = vadd.f32 %v636_v13, %v558_v32 }
 0x136   : > { %665 = vrot.lane.b32.xlu1 %v608_v27, %s3266_s14 }
 0x137   : > { %v518_v33 = vpop.permute.xlu0 %517 }
 0x138   : > { %v551_v37 = vsel %vm549_vm1, %v518_v33, %v534_v30  ;;  %v559_v43 = vsel %vm549_vm1, %v534_v30, %v518_v33  ;;  %v624_v33 = vpop.f32.mrf.mxu2 }
 0x139   : > { %v610_v39 = vadd.f32 %v609_v20, %v551_v37  ;;  %v639_v48 = vadd.f32 %v638_v21, %v559_v43  ;;  %v651_v20 = vpop.f32.mrf.mxu3  ;;  %v3094_v43 = vld [vmem:[%s4808_s1 + $0xe8] sm:$0xff] }
 0x13a   : > { %v540_v63 = vpop.permute.xlu2 %539  ;;  %2822 = vmatmul.msk.bf16.gmra.mxu2 %vm435_vm0, %v3094_v43  ;;  %2826 = vmatmul.msk.bf16.gmra.mxu3 %vm435_vm0, %v3094_v43 }
 0x13b   : > { %667 = vrot.lane.b32.xlu2 %v610_v39, %s3266_s14 }
 0x13e   : > { %681 = vrot.lane.b32.xlu1 %v637_v42, %s3266_s14 }
 0x141   : > { %v653_v39 = vpop.f32.mrf.mxu3 }
 0x142   : > { %v536_v45 = vpop.permute.xlu0 %535  ;;  %v526_v8 = vpop.permute.xlu2 %525 }
 0x143   : > { %v552_v49 = vsel %vm549_vm1, %v520_v44, %v536_v45  ;;  %v560_v51 = vsel %vm549_vm1, %v536_v45, %v520_v44  ;;  %683 = vrot.lane.b32.xlu2 %v639_v48, %s3266_s14  ;;  %v754_v44 = vpop.f32.mrf.mxu0  ;;  %v3095_v48 = vld [vmem:[%s4808_s1 + $0xf0] sm:$0xff] }
 0x144   : > { %v642_v53 = vadd.f32 %v641_v36, %v560_v51  ;;  %v613_v54 = vadd.f32 %v612_v31, %v552_v49  ;;  %v783_v49 = vpop.f32.mrf.mxu1 }
 0x146   : > { %669 = vrot.lane.b32.xlu0 %v613_v54, %s3266_s14  ;;  %685 = vrot.lane.b32.xlu1 %v642_v53, %s3266_s14 }
 0x14a   : > { %v522_v55 = vpop.permute.xlu0 %521  ;;  %v538_v56 = vpop.permute.xlu1 %537  ;;  %2823 = vmatmul.msk.bf16.gmra.mxu2 %vm435_vm0, %v3095_v48  ;;  %2827 = vmatmul.msk.bf16.gmra.mxu3 %vm435_vm0, %v3095_v48 }
 0x14b   : > { %v553_v57 = vsel %vm549_vm1, %v522_v55, %v538_v56  ;;  %v561_v58 = vsel %vm549_vm1, %v538_v56, %v522_v55 }
 0x14c   : > { %v644_v59 = vadd.f32 %v643_v52, %v561_v58  ;;  %v615_v60 = vadd.f32 %v614_v50, %v553_v57  ;;  %v756_v50 = vpop.f32.mrf.mxu0  ;;  %v785_v55 = vpop.f32.mrf.mxu1  ;;  %v3096_v58 = vld [vmem:[%s4808_s1 + $0xf8] sm:$0xff] }
 0x14e   : > { %671 = vrot.lane.b32.xlu1 %v615_v60, %s3266_s14  ;;  %687 = vrot.lane.b32.xlu2 %v644_v59, %s3266_s14 }
 0x152   : > { %v524_v0 = vpop.permute.xlu1 %523  ;;  %v546_v31 = vpop.permute.xlu2 %545 }
 0x153   : > { %v554_v1 = vsel %vm549_vm1, %v524_v0, %v540_v63  ;;  %v562_v2 = vsel %vm549_vm1, %v540_v63, %v524_v0 }
 0x154   : > { %v647_v3 = vadd.f32 %v646_v62, %v562_v2  ;;  %v618_v4 = vadd.f32 %v617_v61, %v554_v1  ;;  %v759_v59 = vpop.f32.mrf.mxu0  ;;  %v788_v60 = vpop.f32.mrf.mxu1 }
 0x156   : > { %689 = vrot.lane.b32.xlu0 %v647_v3, %s3266_s14  ;;  %673 = vrot.lane.b32.xlu2 %v618_v4, %s3266_s14 }
 0x15a   : > { %v542_v9 = vpop.permute.xlu0 %541  ;;  %2824 = vmatmul.msk.bf16.gmra.mxu2 %vm435_vm0, %v3096_v58  ;;  %2828 = vmatmul.msk.bf16.gmra.mxu3 %vm435_vm0, %v3096_v58 }
 0x15b   : > { %v555_v10 = vsel %vm549_vm1, %v526_v8, %v542_v9  ;;  %v563_v11 = vsel %vm549_vm1, %v542_v9, %v526_v8 }
 0x15c   : > { %v649_v12 = vadd.f32 %v648_v7, %v563_v11  ;;  %v620_v13 = vadd.f32 %v619_v6, %v555_v10  ;;  %v761_v4 = vpop.f32.mrf.mxu0  ;;  %v790_v5 = vpop.f32.mrf.mxu1 }
 0x15e   : > { %675 = vrot.lane.b32.xlu0 %v620_v13, %s3266_s14  ;;  %691 = vrot.lane.b32.xlu1 %v649_v12, %s3266_s14 }
 0x162   : > { %v528_v21 = vpop.permute.xlu0 %527  ;;  %v544_v24 = vpop.permute.xlu1 %543 }
 0x163   : > { %v556_v25 = vsel %vm549_vm1, %v528_v21, %v544_v24  ;;  %v564_v26 = vsel %vm549_vm1, %v544_v24, %v528_v21 }
 0x164   : > { %v652_v27 = vadd.f32 %v651_v20, %v564_v26  ;;  %v623_v30 = vadd.f32 %v622_v16, %v556_v25  ;;  %v764_v16 = vpop.f32.mrf.mxu0  ;;  %v793_v20 = vpop.f32.mrf.mxu1 }
 0x166   : > { %677 = vrot.lane.b32.xlu1 %v623_v30, %s3266_s14  ;;  %693 = vrot.lane.b32.xlu2 %v652_v27, %s3266_s14 }
 0x16a   : > { %v530_v32 = vpop.permute.xlu1 %529 }
 0x16b   : > { %v557_v36 = vsel %vm549_vm1, %v530_v32, %v546_v31  ;;  %v565_v38 = vsel %vm549_vm1, %v546_v31, %v530_v32 }
 0x16c   : > { %v625_v37 = vadd.f32 %v624_v33, %v557_v36  ;;  %v654_v42 = vadd.f32 %v653_v39, %v565_v38  ;;  %v766_v33 = vpop.f32.mrf.mxu0  ;;  %v795_v36 = vpop.f32.mrf.mxu1 }
 0x16e   : > { %679 = vrot.lane.b32.xlu0 %v625_v37, %s3266_s14 }
 0x174   : > { %v798_v48 = vpop.f32.mrf.mxu1 }
 0x176   : > { %695 = vrot.lane.b32.xlu0 %v654_v42, %s3266_s14 }
 0x195   : > { %v668_v45 = vpop.permute.xlu2 %667 }
 0x19d   : > { %v684_v51 = vpop.permute.xlu2 %683 }
 0x19e   : > { %v698_v52 = vsel %vm549_vm1, %v668_v45, %v684_v51  ;;  %v706_v54 = vsel %vm549_vm1, %v684_v51, %v668_v45  ;;  %v769_v45 = vpop.f32.mrf.mxu0 }
 0x19f   : > { %v757_v53 = vadd.f32 %v756_v50, %v698_v52  ;;  %v786_v57 = vadd.f32 %v785_v55, %v706_v54 }
 0x1a1   : > { %814 = vrot.lane.b32.xlu0 %v757_v53, %s3266_s14 }
 0x1a8   : > { %v666_v56 = vpop.permute.xlu1 %665  ;;  %v688_v8 = vpop.permute.xlu2 %687 }
 0x1a9   : > { %830 = vrot.lane.b32.xlu0 %v786_v57, %s3266_s14  ;;  %v771_v57 = vpop.f32.mrf.mxu0 }
 0x1b0   : > { %v682_v61 = vpop.permute.xlu1 %681  ;;  %v674_v21 = vpop.permute.xlu2 %673 }
 0x1b1   : > { %v697_v62 = vsel %vm549_vm1, %v666_v56, %v682_v61  ;;  %v705_v0 = vsel %vm549_vm1, %v682_v61, %v666_v56 }
 0x1b2   : > { %v755_v63 = vadd.f32 %v754_v44, %v697_v62  ;;  %v784_v7 = vadd.f32 %v783_v49, %v705_v0  ;;  %v800_v62 = vpop.f32.mrf.mxu1  ;;  %v3098_v0 = vld [vmem:[%s4808_s1 + $0xc8] sm:$0xff] }
 0x1b4   : > { %812 = vrot.lane.b32.xlu2 %v755_v63, %s3266_s14 }
 0x1b8   : > { %v670_v1 = vpop.permute.xlu0 %669  ;;  %v686_v2 = vpop.permute.xlu1 %685 }
 0x1b9   : > { %v699_v3 = vsel %vm549_vm1, %v670_v1, %v686_v2  ;;  %v707_v9 = vsel %vm549_vm1, %v686_v2, %v670_v1  ;;  %v3099_v2 = vld [vmem:[%s4808_s1 + $0xd0] sm:$0xff] }
 0x1ba   : > { %v760_v6 = vadd.f32 %v759_v59, %v699_v3  ;;  %v789_v12 = vadd.f32 %v788_v60, %v707_v9  ;;  %v3097_v60 = vld [vmem:[%s4808_s1 + $0xc0] sm:$0xff]  ;;  %v901_v3 = vpop.f32.mrf.mxu2 }
 0x1bb   : > { %2853 = vmatmul.msk.bf16.vlgmr.msra.gmra.mxu0 %vm435_vm0, %v3097_v60  ;;  %2857 = vmatmul.msk.bf16.vlgmr.msra.gmra.mxu1 %vm435_vm0, %v3097_v60 }
 0x1bc   : > { %816 = vrot.lane.b32.xlu1 %v760_v6, %s3266_s14  ;;  %828 = vrot.lane.b32.xlu2 %v784_v7, %s3266_s14 }
 0x1bd   : > { %1629 = vmatpush.bf16.msra.mxu0 %v3349_v15  ;;  %1658 = vmatpush.bf16.msra.mxu1 %v3354_v19 }
 0x1c0   : > { %v672_v10 = vpop.permute.xlu1 %671  ;;  %v694_v49 = vpop.permute.xlu2 %693 }
 0x1c1   : > { %v708_v11 = vsel %vm549_vm1, %v688_v8, %v672_v10  ;;  %v700_v24 = vsel %vm549_vm1, %v672_v10, %v688_v8  ;;  %1630 = vmatpush.bf16.msra.mxu0 %v3359_v22  ;;  %1659 = vmatpush.bf16.msra.mxu1 %v3363_v23 }
 0x1c2   : > { %v791_v13 = vadd.f32 %v790_v5, %v708_v11  ;;  %v762_v32 = vadd.f32 %v761_v4, %v700_v24  ;;  %v930_v4 = vpop.f32.mrf.mxu3  ;;  %v903_v9 = vpop.f32.mrf.mxu2 }
 0x1c4   : > { %834 = vrot.lane.b32.xlu0 %v791_v13, %s3266_s14  ;;  %832 = vrot.lane.b32.xlu2 %v789_v12, %s3266_s14 }
 0x1c5   : > { %1631 = vmatpush.bf16.msra.mxu0 %v3371_v28  ;;  %1660 = vmatpush.bf16.msra.mxu1 %v3375_v29 }
 0x1c8   : > { %v690_v25 = vpop.permute.xlu0 %689 }
 0x1c9   : > { %v701_v26 = vsel %vm549_vm1, %v674_v21, %v690_v25  ;;  %v709_v27 = vsel %vm549_vm1, %v690_v25, %v674_v21  ;;  %1632 = vmatpush.bf16.msra.mxu0 %v3383_v34  ;;  %1661 = vmatpush.bf16.msra.mxu1 %v3387_v35 }
 0x1ca   : > { %v765_v30 = vadd.f32 %v764_v16, %v701_v26  ;;  %v794_v31 = vadd.f32 %v793_v20, %v709_v27  ;;  %v932_v12 = vpop.f32.mrf.mxu3  ;;  %v3100_v20 = vld [vmem:[%s4808_s1 + $0xd8] sm:$0xff]  ;;  %v906_v25 = vpop.f32.mrf.mxu2 }
 0x1cb   : > { %2854 = vmatmul.msk.bf16.gmra.mxu0 %vm435_vm0, %v3098_v0  ;;  %2858 = vmatmul.msk.bf16.gmra.mxu1 %vm435_vm0, %v3098_v0 }
 0x1cc   : > { %836 = vrot.lane.b32.xlu1 %v794_v31, %s3266_s14  ;;  %820 = vrot.lane.b32.xlu0 %v765_v30, %s3266_s14 }
 0x1cd   : > { %818 = vrot.lane.b32.xlu2 %v762_v32, %s3266_s14  ;;  %1633 = vmatpush.bf16.msra.mxu0 %v3395_v40 }
 0x1ce   : > { %1662 = vmatpush.bf16.msra.mxu1 %v3399_v41 }
 0x1d0   : > { %v676_v37 = vpop.permute.xlu0 %675  ;;  %v692_v38 = vpop.permute.xlu1 %691 }
 0x1d1   : > { %v702_v39 = vsel %vm549_vm1, %v676_v37, %v692_v38  ;;  %v710_v42 = vsel %vm549_vm1, %v692_v38, %v676_v37  ;;  %1634 = vmatpush.bf16.msra.mxu0 %v3407_v46 }
 0x1d2   : > { %v767_v43 = vadd.f32 %v766_v33, %v702_v39  ;;  %v796_v44 = vadd.f32 %v795_v36, %v710_v42  ;;  %1663 = vmatpush.bf16.msra.mxu1 %v3411_v47  ;;  %v935_v26 = vpop.f32.mrf.mxu3  ;;  %v908_v36 = vpop.f32.mrf.mxu2 }
 0x1d4   : > { %822 = vrot.lane.b32.xlu1 %v767_v43, %s3266_s14 }
 0x1d5   : > { %838 = vrot.lane.b32.xlu2 %v796_v44, %s3266_s14 }
 0x1d8   : > { %v678_v50 = vpop.permute.xlu1 %677 }
 0x1d9   : > { %v703_v51 = vsel %vm549_vm1, %v678_v50, %v694_v49  ;;  %v711_v52 = vsel %vm549_vm1, %v694_v49, %v678_v50 }
 0x1da   : > { %v770_v53 = vadd.f32 %v769_v45, %v703_v51  ;;  %v799_v54 = vadd.f32 %v798_v48, %v711_v52  ;;  %v937_v37 = vpop.f32.mrf.mxu3  ;;  %v911_v50 = vpop.f32.mrf.mxu2 }
 0x1db   : > { %2855 = vmatmul.msk.bf16.gmra.mxu0 %vm435_vm0, %v3099_v2  ;;  %2859 = vmatmul.msk.bf16.gmra.mxu1 %vm435_vm0, %v3099_v2 }
 0x1dc   : > { %840 = vrot.lane.b32.xlu0 %v799_v54, %s3266_s14 }
 0x1dd   : > { %824 = vrot.lane.b32.xlu2 %v770_v53, %s3266_s14 }
 0x1e0   : > { %v680_v55 = vpop.permute.xlu0 %679 }
 0x1e2   : > { %v940_v51 = vpop.f32.mrf.mxu3 }
 0x1e8   : > { %v696_v56 = vpop.permute.xlu0 %695 }
 0x1e9   : > { %v704_v58 = vsel %vm549_vm1, %v680_v55, %v696_v56  ;;  %v712_v61 = vsel %vm549_vm1, %v696_v56, %v680_v55 }
 0x1ea   : > { %v772_v59 = vadd.f32 %v771_v57, %v704_v58  ;;  %v801_v63 = vadd.f32 %v800_v62, %v712_v61  ;;  %v913_v58 = vpop.f32.mrf.mxu2 }
 0x1eb   : > { %2856 = vmatmul.msk.bf16.gmra.mxu0 %vm435_vm0, %v3100_v20  ;;  %2860 = vmatmul.msk.bf16.gmra.mxu1 %vm435_vm0, %v3100_v20 }
 0x1ec   : > { %826 = vrot.lane.b32.xlu1 %v772_v59, %s3266_s14  ;;  %v942_v59 = vpop.f32.mrf.mxu3 }
 0x1f2   : > { %v916_v2 = vpop.f32.mrf.mxu2 }
 0x1f4   : > { %842 = vrot.lane.b32.xlu1 %v801_v63, %s3266_s14 }
 0x20e   : > { %v813_v1 = vpop.permute.xlu2 %812 }
 0x213   : > { %v815_v5 = vpop.permute.xlu0 %814 }
 0x216   : > { %v829_v6 = vpop.permute.xlu2 %828 }
 0x217   : > { %v844_v7 = vsel %vm549_vm1, %v813_v1, %v829_v6  ;;  %v852_v10 = vsel %vm549_vm1, %v829_v6, %v813_v1 }
 0x218   : > { %v902_v8 = vadd.f32 %v901_v3, %v844_v7  ;;  %v931_v21 = vadd.f32 %v930_v4, %v852_v10  ;;  %v945_v3 = vpop.f32.mrf.mxu3  ;;  %v3101_v10 = vld [vmem:[%s4808_s1 + $0xa0] sm:$0xff] }
 0x219   : > { %2885 = vmatmul.msk.bf16.vlgmr.msra.gmra.mxu2 %vm435_vm0, %v3101_v10  ;;  %2889 = vmatmul.msk.bf16.vlgmr.msra.gmra.mxu3 %vm435_vm0, %v3101_v10 }
 0x21a   : > { %959 = vrot.lane.b32.xlu0 %v902_v8, %s3266_s14  ;;  %1776 = vmatpush.bf16.msra.mxu2 %v3349_v15 }
 0x21b   : > { %v831_v11 = vpop.permute.xlu0 %830  ;;  %1805 = vmatpush.bf16.msra.mxu3 %v3354_v19 }
 0x21c   : > { %v845_v13 = vsel %vm549_vm1, %v815_v5, %v831_v11  ;;  %v853_v24 = vsel %vm549_vm1, %v831_v11, %v815_v5 }
 0x21d   : > { %v904_v16 = vadd.f32 %v903_v9, %v845_v13  ;;  %v933_v27 = vadd.f32 %v932_v12, %v853_v24  ;;  %v918_v13 = vpop.f32.mrf.mxu2 }
 0x21e   : > { %v833_v30 = vpop.permute.xlu2 %832  ;;  %1777 = vmatpush.bf16.msra.mxu2 %v3359_v22 }
 0x21f   : > { %961 = vrot.lane.b32.xlu1 %v904_v16, %s3266_s14  ;;  %1806 = vmatpush.bf16.msra.mxu3 %v3363_v23 }
 0x220   : > { %v947_v24 = vpop.f32.mrf.mxu3 }
 0x222   : > { %975 = vrot.lane.b32.xlu0 %v931_v21, %s3266_s14  ;;  %1778 = vmatpush.bf16.msra.mxu2 %v3371_v28 }
 0x223   : > { %1807 = vmatpush.bf16.msra.mxu3 %v3375_v29 }
 0x226   : > { %1779 = vmatpush.bf16.msra.mxu2 %v3383_v34 }
 0x227   : > { %977 = vrot.lane.b32.xlu1 %v933_v27, %s3266_s14  ;;  %v819_v42 = vpop.permute.xlu2 %818  ;;  %1808 = vmatpush.bf16.msra.mxu3 %v3387_v35 }
 0x22a   : > { %1780 = vmatpush.bf16.msra.mxu2 %v3395_v40 }
 0x22b   : > { %1809 = vmatpush.bf16.msra.mxu3 %v3399_v41 }
 0x22e   : > { %v817_v31 = vpop.permute.xlu1 %816  ;;  %1781 = vmatpush.bf16.msra.mxu2 %v3407_v46 }
 0x22f   : > { %v846_v32 = vsel %vm549_vm1, %v817_v31, %v833_v30  ;;  %v854_v33 = vsel %vm549_vm1, %v833_v30, %v817_v31  ;;  %v839_v60 = vpop.permute.xlu2 %838  ;;  %1810 = vmatpush.bf16.msra.mxu3 %v3411_v47  ;;  %v3103_v30 = vld [vmem:[%s4808_s1 + $0xb0] sm:$0xff] }
 0x230   : > { %v907_v38 = vadd.f32 %v906_v25, %v846_v32  ;;  %v936_v39 = vadd.f32 %v935_v26, %v854_v33  ;;  %v3102_v26 = vld [vmem:[%s4808_s1 + $0xa8] sm:$0xff] }
 0x231   : > { %2886 = vmatmul.msk.bf16.gmra.mxu2 %vm435_vm0, %v3102_v26  ;;  %2890 = vmatmul.msk.bf16.gmra.mxu3 %vm435_vm0, %v3102_v26 }
 0x232   : > { %979 = vrot.lane.b32.xlu0 %v936_v39, %s3266_s14  ;;  %963 = vrot.lane.b32.xlu2 %v907_v38, %s3266_s14 }
 0x236   : > { %v835_v43 = vpop.permute.xlu0 %834 }
 0x237   : > { %v847_v44 = vsel %vm549_vm1, %v819_v42, %v835_v43  ;;  %v855_v45 = vsel %vm549_vm1, %v835_v43, %v819_v42  ;;  %v825_v4 = vpop.permute.xlu2 %824  ;;  %v3104_v43 = vld [vmem:[%s4808_s1 + $0xb8] sm:$0xff] }
 0x238   : > { %v909_v48 = vadd.f32 %v908_v36, %v847_v44  ;;  %v938_v49 = vadd.f32 %v937_v37, %v855_v45  ;;  %v1048_v27 = vpop.f32.mrf.mxu0  ;;  %v1077_v31 = vpop.f32.mrf.mxu1 }
 0x23a   : > { %981 = vrot.lane.b32.xlu1 %v938_v49, %s3266_s14  ;;  %965 = vrot.lane.b32.xlu0 %v909_v48, %s3266_s14 }
 0x23e   : > { %v837_v52 = vpop.permute.xlu1 %836  ;;  %v821_v53 = vpop.permute.xlu0 %820 }
 0x23f   : > { %v848_v54 = vsel %vm549_vm1, %v821_v53, %v837_v52  ;;  %v856_v55 = vsel %vm549_vm1, %v837_v52, %v821_v53 }
 0x240   : > { %v912_v56 = vadd.f32 %v911_v50, %v848_v54  ;;  %v941_v57 = vadd.f32 %v940_v51, %v856_v55  ;;  %v1050_v33 = vpop.f32.mrf.mxu0  ;;  %v1079_v36 = vpop.f32.mrf.mxu1 }
 0x241   : > { %2887 = vmatmul.msk.bf16.gmra.mxu2 %vm435_vm0, %v3103_v30  ;;  %2891 = vmatmul.msk.bf16.gmra.mxu3 %vm435_vm0, %v3103_v30 }
 0x242   : > { %983 = vrot.lane.b32.xlu2 %v941_v57, %s3266_s14  ;;  %967 = vrot.lane.b32.xlu1 %v912_v56, %s3266_s14 }
 0x246   : > { %v823_v61 = vpop.permute.xlu1 %822 }
 0x247   : > { %v849_v62 = vsel %vm549_vm1, %v823_v61, %v839_v60  ;;  %v857_v63 = vsel %vm549_vm1, %v839_v60, %v823_v61 }
 0x248   : > { %v914_v0 = vadd.f32 %v913_v58, %v849_v62  ;;  %v943_v1 = vadd.f32 %v942_v59, %v857_v63  ;;  %v1053_v44 = vpop.f32.mrf.mxu0  ;;  %v1082_v49 = vpop.f32.mrf.mxu1 }
 0x24a   : > { %985 = vrot.lane.b32.xlu0 %v943_v1, %s3266_s14  ;;  %969 = vrot.lane.b32.xlu2 %v914_v0, %s3266_s14 }
 0x24e   : > { %v841_v5 = vpop.permute.xlu0 %840 }
 0x24f   : > { %v850_v6 = vsel %vm549_vm1, %v825_v4, %v841_v5  ;;  %v858_v7 = vsel %vm549_vm1, %v841_v5, %v825_v4 }
 0x250   : > { %v917_v8 = vadd.f32 %v916_v2, %v850_v6  ;;  %v946_v9 = vadd.f32 %v945_v3, %v858_v7  ;;  %v1055_v58 = vpop.f32.mrf.mxu0  ;;  %v1084_v60 = vpop.f32.mrf.mxu1 }
 0x251   : > { %2888 = vmatmul.msk.bf16.gmra.mxu2 %vm435_vm0, %v3104_v43  ;;  %2892 = vmatmul.msk.bf16.gmra.mxu3 %vm435_vm0, %v3104_v43 }
 0x252   : > { %987 = vrot.lane.b32.xlu1 %v946_v9, %s3266_s14  ;;  %971 = vrot.lane.b32.xlu0 %v917_v8, %s3266_s14 }
 0x258   : > { %v1058_v5 = vpop.f32.mrf.mxu0  ;;  %v1087_v6 = vpop.f32.mrf.mxu1 }
 0x25e   : > { %v827_v11 = vpop.permute.xlu1 %826 }
 0x266   : > { %v843_v12 = vpop.permute.xlu1 %842 }
 0x267   : > { %v851_v16 = vsel %vm549_vm1, %v827_v11, %v843_v12  ;;  %v859_v21 = vsel %vm549_vm1, %v843_v12, %v827_v11 }
 0x268   : > { %v919_v20 = vadd.f32 %v918_v13, %v851_v16  ;;  %v948_v25 = vadd.f32 %v947_v24, %v859_v21  ;;  %v1060_v13 = vpop.f32.mrf.mxu0  ;;  %v1089_v16 = vpop.f32.mrf.mxu1 }
 0x26a   : > { %973 = vrot.lane.b32.xlu2 %v919_v20, %s3266_s14 }
 0x270   : > { %v1063_v30 = vpop.f32.mrf.mxu0 }
 0x272   : > { %989 = vrot.lane.b32.xlu2 %v948_v25, %s3266_s14 }
 0x28c   : > { %v960_v32 = vpop.permute.xlu0 %959  ;;  %v964_v54 = vpop.permute.xlu2 %963 }
 0x291   : > { %v962_v37 = vpop.permute.xlu1 %961 }
 0x294   : > { %v976_v38 = vpop.permute.xlu0 %975 }
 0x295   : > { %v991_v39 = vsel %vm549_vm1, %v960_v32, %v976_v38  ;;  %v999_v45 = vsel %vm549_vm1, %v976_v38, %v960_v32 }
 0x296   : > { %v1049_v42 = vadd.f32 %v1048_v27, %v991_v39  ;;  %v1078_v52 = vadd.f32 %v1077_v31, %v999_v45  ;;  %v1092_v31 = vpop.f32.mrf.mxu1 }
 0x298   : > { %1106 = vrot.lane.b32.xlu1 %v1049_v42, %s3266_s14 }
 0x299   : > { %v978_v48 = vpop.permute.xlu1 %977 }
 0x29a   : > { %v992_v50 = vsel %vm549_vm1, %v962_v37, %v978_v48  ;;  %v1000_v53 = vsel %vm549_vm1, %v978_v48, %v962_v37 }
 0x29b   : > { %v1051_v51 = vadd.f32 %v1050_v33, %v992_v50  ;;  %v1080_v56 = vadd.f32 %v1079_v36, %v1000_v53 }
 0x29c   : > { %v984_v7 = vpop.permute.xlu2 %983 }
 0x29d   : > { %1108 = vrot.lane.b32.xlu2 %v1051_v51, %s3266_s14 }
 0x29e   : > { %v1094_v50 = vpop.f32.mrf.mxu1 }
 0x2a0   : > { %1122 = vrot.lane.b32.xlu1 %v1078_v52, %s3266_s14  ;;  %v3105_v52 = vld [vmem:[%s4808_s1 + $0x80] sm:$0xff] }
 0x2a1   : > { %2917 = vmatmul.msk.bf16.vlgmr.msrb.gmra.mxu0 %vm435_vm0, %v3105_v52  ;;  %2921 = vmatmul.msk.bf16.vlgmr.msrb.gmra.mxu1 %vm435_vm0, %v3105_v52 }
 0x2a2   : > { %1922 = vmatpush.bf16.msrb.mxu0 %v3349_v15  ;;  %1951 = vmatpush.bf16.msrb.mxu1 %v3354_v19  ;;  %v3106_v15 = vld [vmem:[%s4808_s1 + $0x88] sm:$0xff]  ;;  %v1195_v19 = vpop.f32.mrf.mxu2 }
 0x2a4   : > { %v980_v55 = vpop.permute.xlu0 %979  ;;  %v970_v20 = vpop.permute.xlu2 %969 }
 0x2a5   : > { %v993_v57 = vsel %vm549_vm1, %v964_v54, %v980_v55  ;;  %v1001_v59 = vsel %vm549_vm1, %v980_v55, %v964_v54  ;;  %1124 = vrot.lane.b32.xlu2 %v1080_v56, %s3266_s14 }
 0x2a6   : > { %v1054_v61 = vadd.f32 %v1053_v44, %v993_v57  ;;  %v1083_v62 = vadd.f32 %v1082_v49, %v1001_v59  ;;  %v1065_v44 = vpop.f32.mrf.mxu0  ;;  %1923 = vmatpush.bf16.msrb.mxu0 %v3359_v22  ;;  %1952 = vmatpush.bf16.msrb.mxu1 %v3363_v23  ;;  %v1224_v23 = vpop.f32.mrf.mxu3 }
 0x2a8   : > { %1126 = vrot.lane.b32.xlu1 %v1083_v62, %s3266_s14  ;;  %1110 = vrot.lane.b32.xlu0 %v1054_v61, %s3266_s14 }
 0x2aa   : > { %1924 = vmatpush.bf16.msrb.mxu0 %v3371_v28  ;;  %1953 = vmatpush.bf16.msrb.mxu1 %v3375_v29  ;;  %v1197_v28 = vpop.f32.mrf.mxu2 }
 0x2ac   : > { %v982_v63 = vpop.permute.xlu1 %981  ;;  %v966_v0 = vpop.permute.xlu0 %965 }
 0x2ad   : > { %v994_v1 = vsel %vm549_vm1, %v966_v0, %v982_v63  ;;  %v1002_v2 = vsel %vm549_vm1, %v982_v63, %v966_v0 }
 0x2ae   : > { %v1056_v3 = vadd.f32 %v1055_v58, %v994_v1  ;;  %v1085_v4 = vadd.f32 %v1084_v60, %v1002_v2  ;;  %1925 = vmatpush.bf16.msrb.mxu0 %v3383_v34  ;;  %1954 = vmatpush.bf16.msrb.mxu1 %v3387_v35  ;;  %v3108_v58 = vld [vmem:[%s4808_s1 + $0x98] sm:$0xff] }
 0x2b0   : > { %1128 = vrot.lane.b32.xlu2 %v1085_v4, %s3266_s14  ;;  %1112 = vrot.lane.b32.xlu1 %v1056_v3, %s3266_s14 }
 0x2b1   : > { %2918 = vmatmul.msk.bf16.gmra.mxu0 %vm435_vm0, %v3106_v15  ;;  %2922 = vmatmul.msk.bf16.gmra.mxu1 %vm435_vm0, %v3106_v15 }
 0x2b2   : > { %1926 = vmatpush.bf16.msrb.mxu0 %v3395_v40  ;;  %1955 = vmatpush.bf16.msrb.mxu1 %v3399_v41  ;;  %v3107_v40 = vld [vmem:[%s4808_s1 + $0x90] sm:$0xff] }
 0x2b4   : > { %v968_v8 = vpop.permute.xlu1 %967  ;;  %v1200_v54 = vpop.f32.mrf.mxu2 }
 0x2b5   : > { %v995_v9 = vsel %vm549_vm1, %v968_v8, %v984_v7  ;;  %v1003_v10 = vsel %vm549_vm1, %v984_v7, %v968_v8 }
 0x2b6   : > { %v1059_v11 = vadd.f32 %v1058_v5, %v995_v9  ;;  %v1088_v12 = vadd.f32 %v1087_v6, %v1003_v10  ;;  %1927 = vmatpush.bf16.msrb.mxu0 %v3407_v46  ;;  %1956 = vmatpush.bf16.msrb.mxu1 %v3411_v47  ;;  %v1226_v46 = vpop.f32.mrf.mxu3 }
 0x2b8   : > { %1130 = vrot.lane.b32.xlu0 %v1088_v12, %s3266_s14  ;;  %1114 = vrot.lane.b32.xlu2 %v1059_v11, %s3266_s14 }
 0x2bc   : > { %v986_v21 = vpop.permute.xlu0 %985  ;;  %v1202_v0 = vpop.f32.mrf.mxu2 }
 0x2bd   : > { %v996_v24 = vsel %vm549_vm1, %v970_v20, %v986_v21  ;;  %v1004_v25 = vsel %vm549_vm1, %v986_v21, %v970_v20 }
 0x2be   : > { %v1061_v26 = vadd.f32 %v1060_v13, %v996_v24  ;;  %v1090_v27 = vadd.f32 %v1089_v16, %v1004_v25  ;;  %v1229_v55 = vpop.f32.mrf.mxu3 }
 0x2c0   : > { %1132 = vrot.lane.b32.xlu1 %v1090_v27, %s3266_s14  ;;  %1116 = vrot.lane.b32.xlu0 %v1061_v26, %s3266_s14 }
 0x2c1   : > { %2919 = vmatmul.msk.bf16.gmra.mxu0 %vm435_vm0, %v3107_v40  ;;  %2923 = vmatmul.msk.bf16.gmra.mxu1 %vm435_vm0, %v3107_v40  ;;  %v3111_v40 = vld [vmem:[%s4808_s1 + $0x70] sm:$0xff] }
 0x2c4   : > { %v988_v32 = vpop.permute.xlu1 %987  ;;  %v972_v33 = vpop.permute.xlu0 %971 }
 0x2c5   : > { %v997_v36 = vsel %vm549_vm1, %v972_v33, %v988_v32  ;;  %v974_v37 = vpop.permute.xlu2 %973  ;;  %v1005_v38 = vsel %vm549_vm1, %v988_v32, %v972_v33  ;;  %v1205_v10 = vpop.f32.mrf.mxu2 }
 0x2c6   : > { %v1064_v39 = vadd.f32 %v1063_v30, %v997_v36  ;;  %v1093_v42 = vadd.f32 %v1092_v31, %v1005_v38  ;;  %v1231_v1 = vpop.f32.mrf.mxu3 }
 0x2c8   : > { %1134 = vrot.lane.b32.xlu2 %v1093_v42, %s3266_s14  ;;  %1118 = vrot.lane.b32.xlu1 %v1064_v39, %s3266_s14  ;;  %v3109_v39 = vld [vmem:[%s4808_s1 + $0x60] sm:$0xff] }
 0x2c9   : > { %2949 = vmatmul.msk.bf16.vlgmr.msrb.gmra.mxu2 %vm435_vm0, %v3109_v39  ;;  %2953 = vmatmul.msk.bf16.vlgmr.msrb.gmra.mxu3 %vm435_vm0, %v3109_v39 }
 0x2cd   : > { %v990_v43 = vpop.permute.xlu2 %989  ;;  %v1207_v27 = vpop.f32.mrf.mxu2 }
 0x2ce   : > { %v998_v45 = vsel %vm549_vm1, %v974_v37, %v990_v43  ;;  %v1006_v49 = vsel %vm549_vm1, %v990_v43, %v974_v37  ;;  %v1234_v11 = vpop.f32.mrf.mxu3 }
 0x2cf   : > { %v1066_v48 = vadd.f32 %v1065_v44, %v998_v45  ;;  %v1095_v51 = vadd.f32 %v1094_v50, %v1006_v49 }
 0x2d1   : > { %1120 = vrot.lane.b32.xlu0 %v1066_v48, %s3266_s14  ;;  %2920 = vmatmul.msk.bf16.gmra.mxu0 %vm435_vm0, %v3108_v58 }
 0x2d2   : > { %2924 = vmatmul.msk.bf16.gmra.mxu1 %vm435_vm0, %v3108_v58 }
 0x2d5   : > { %v1210_v42 = vpop.f32.mrf.mxu2 }
 0x2d6   : > { %v1236_v30 = vpop.f32.mrf.mxu3 }
 0x2d9   : > { %1136 = vrot.lane.b32.xlu0 %v1095_v51, %s3266_s14 }
 0x2de   : > { %v1239_v43 = vpop.f32.mrf.mxu3 }
 0x2f7   : > { %v1109_v22 = vpop.permute.xlu2 %1108 }
 0x2ff   : > { %v1125_v29 = vpop.permute.xlu2 %1124 }
 0x300   : > { %v1139_v34 = vsel %vm549_vm1, %v1109_v22, %v1125_v29  ;;  %v1147_v41 = vsel %vm549_vm1, %v1125_v29, %v1109_v22  ;;  %v1241_v29 = vpop.f32.mrf.mxu3 }
 0x301   : > { %v1198_v35 = vadd.f32 %v1197_v28, %v1139_v34  ;;  %v1227_v53 = vadd.f32 %v1226_v46, %v1147_v41 }
 0x303   : > { %1255 = vrot.lane.b32.xlu0 %v1198_v35, %s3266_s14  ;;  %v3110_v35 = vld [vmem:[%s4808_s1 + $0x68] sm:$0xff] }
 0x304   : > { %2950 = vmatmul.msk.bf16.gmra.mxu2 %vm435_vm0, %v3110_v35  ;;  %2954 = vmatmul.msk.bf16.gmra.mxu3 %vm435_vm0, %v3110_v35 }
 0x30a   : > { %v1107_v47 = vpop.permute.xlu1 %1106  ;;  %v1129_v4 = vpop.permute.xlu2 %1128 }
 0x30b   : > { %1271 = vrot.lane.b32.xlu0 %v1227_v53, %s3266_s14 }
 0x312   : > { %v1123_v56 = vpop.permute.xlu1 %1122  ;;  %v1115_v13 = vpop.permute.xlu2 %1114 }
 0x313   : > { %v1138_v57 = vsel %vm549_vm1, %v1107_v47, %v1123_v56  ;;  %v1146_v60 = vsel %vm549_vm1, %v1123_v56, %v1107_v47 }
 0x314   : > { %v1196_v59 = vadd.f32 %v1195_v19, %v1138_v57  ;;  %v1225_v2 = vadd.f32 %v1224_v23, %v1146_v60  ;;  %v1212_v19 = vpop.f32.mrf.mxu2  ;;  %2951 = vmatmul.msk.bf16.gmra.mxu2 %vm435_vm0, %v3111_v40  ;;  %2955 = vmatmul.msk.bf16.gmra.mxu3 %vm435_vm0, %v3111_v40  ;;  %v3112_v57 = vld [vmem:[%s4808_s1 + $0x78] sm:$0xff] }
 0x316   : > { %1253 = vrot.lane.b32.xlu2 %v1196_v59, %s3266_s14 }
 0x31a   : > { %v1127_v61 = vpop.permute.xlu1 %1126  ;;  %v1111_v62 = vpop.permute.xlu0 %1110 }
 0x31b   : > { %v1140_v63 = vsel %vm549_vm1, %v1111_v62, %v1127_v61  ;;  %v1148_v5 = vsel %vm549_vm1, %v1127_v61, %v1111_v62 }
 0x31c   : > { %v1201_v3 = vadd.f32 %v1200_v54, %v1140_v63  ;;  %v1230_v8 = vadd.f32 %v1229_v55, %v1148_v5 }
 0x31e   : > { %1269 = vrot.lane.b32.xlu2 %v1225_v2, %s3266_s14  ;;  %1257 = vrot.lane.b32.xlu1 %v1201_v3, %s3266_s14  ;;  %v1342_v46 = vpop.f32.mrf.mxu0  ;;  %v1371_v47 = vpop.f32.mrf.mxu1 }
 0x322   : > { %v1113_v6 = vpop.permute.xlu1 %1112  ;;  %v1135_v44 = vpop.permute.xlu2 %1134 }
 0x323   : > { %v1149_v7 = vsel %vm549_vm1, %v1129_v4, %v1113_v6  ;;  %v1141_v12 = vsel %vm549_vm1, %v1113_v6, %v1129_v4 }
 0x324   : > { %v1232_v9 = vadd.f32 %v1231_v1, %v1149_v7  ;;  %v1203_v24 = vadd.f32 %v1202_v0, %v1141_v12  ;;  %2952 = vmatmul.msk.bf16.gmra.mxu2 %vm435_vm0, %v3112_v57  ;;  %2956 = vmatmul.msk.bf16.gmra.mxu3 %vm435_vm0, %v3112_v57 }
 0x326   : > { %1273 = vrot.lane.b32.xlu2 %v1230_v8, %s3266_s14  ;;  %1275 = vrot.lane.b32.xlu0 %v1232_v9, %s3266_s14  ;;  %v1344_v58 = vpop.f32.mrf.mxu0  ;;  %v1373_v61 = vpop.f32.mrf.mxu1 }
 0x32a   : > { %v1131_v16 = vpop.permute.xlu0 %1130 }
 0x32b   : > { %v1142_v20 = vsel %vm549_vm1, %v1115_v13, %v1131_v16  ;;  %v1150_v21 = vsel %vm549_vm1, %v1131_v16, %v1115_v13 }
 0x32c   : > { %v1206_v25 = vadd.f32 %v1205_v10, %v1142_v20  ;;  %v1235_v26 = vadd.f32 %v1234_v11, %v1150_v21 }
 0x32e   : > { %1259 = vrot.lane.b32.xlu2 %v1203_v24, %s3266_s14  ;;  %1277 = vrot.lane.b32.xlu1 %v1235_v26, %s3266_s14  ;;  %v1347_v2 = vpop.f32.mrf.mxu0  ;;  %v1376_v3 = vpop.f32.mrf.mxu1 }
 0x32f   : > { %1261 = vrot.lane.b32.xlu0 %v1206_v25, %s3266_s14 }
 0x332   : > { %v1133_v31 = vpop.permute.xlu1 %1132  ;;  %v1117_v32 = vpop.permute.xlu0 %1116 }
 0x333   : > { %v1143_v33 = vsel %vm549_vm1, %v1117_v32, %v1133_v31  ;;  %v1151_v36 = vsel %vm549_vm1, %v1133_v31, %v1117_v32 }
 0x334   : > { %v1208_v37 = vadd.f32 %v1207_v27, %v1143_v33  ;;  %v1237_v38 = vadd.f32 %v1236_v30, %v1151_v36 }
 0x336   : > { %1279 = vrot.lane.b32.xlu2 %v1237_v38, %s3266_s14  ;;  %1263 = vrot.lane.b32.xlu1 %v1208_v37, %s3266_s14  ;;  %v1349_v9 = vpop.f32.mrf.mxu0  ;;  %v1378_v10 = vpop.f32.mrf.mxu1 }
 0x33a   : > { %v1119_v45 = vpop.permute.xlu1 %1118 }
 0x33b   : > { %v1144_v48 = vsel %vm549_vm1, %v1119_v45, %v1135_v44  ;;  %v1152_v49 = vsel %vm549_vm1, %v1135_v44, %v1119_v45 }
 0x33c   : > { %v1211_v50 = vadd.f32 %v1210_v42, %v1144_v48  ;;  %v1240_v51 = vadd.f32 %v1239_v43, %v1152_v49 }
 0x33e   : > { %1281 = vrot.lane.b32.xlu0 %v1240_v51, %s3266_s14  ;;  %1265 = vrot.lane.b32.xlu2 %v1211_v50, %s3266_s14  ;;  %v1352_v26 = vpop.f32.mrf.mxu0  ;;  %v1381_v27 = vpop.f32.mrf.mxu1 }
 0x343   : > { %v1121_v52 = vpop.permute.xlu0 %1120 }
 0x346   : > { %v1354_v38 = vpop.f32.mrf.mxu0  ;;  %v1383_v39 = vpop.f32.mrf.mxu1 }
 0x34b   : > { %v1137_v15 = vpop.permute.xlu0 %1136 }
 0x34c   : > { %v1145_v22 = vsel %vm549_vm1, %v1121_v52, %v1137_v15  ;;  %v1153_v28 = vsel %vm549_vm1, %v1137_v15, %v1121_v52  ;;  %v1518_v57 = vpop.f32.mrf.mxu3 }
 0x34d   : > { %v1213_v23 = vadd.f32 %v1212_v19, %v1145_v22  ;;  %v1242_v34 = vadd.f32 %v1241_v29, %v1153_v28  ;;  %v3113_v29 = vld [vmem:[%s4808_s1 + $0x40] sm:$0xff] }
 0x34e   : > { %v1357_v50 = vpop.f32.mrf.mxu0  ;;  %2981 = vmatmul.msk.bf16.vlgmr.msra.gmra.mxu0 %vm435_vm0, %v3113_v29  ;;  %2985 = vmatmul.msk.bf16.vlgmr.msra.gmra.mxu1 %vm435_vm0, %v3113_v29 }
 0x34f   : > { %1267 = vrot.lane.b32.xlu1 %v1213_v23, %s3266_s14  ;;  %v1386_v51 = vpop.f32.mrf.mxu1 }
 0x356   : > { %v1359_v40 = vpop.f32.mrf.mxu0 }
 0x357   : > { %1283 = vrot.lane.b32.xlu1 %v1242_v34, %s3266_s14 }
 0x370   : > { %v1254_v41 = vpop.permute.xlu2 %1253 }
 0x375   : > { %v1256_v53 = vpop.permute.xlu0 %1255 }
 0x378   : > { %v1270_v54 = vpop.permute.xlu2 %1269 }
 0x379   : > { %v1285_v55 = vsel %vm549_vm1, %v1254_v41, %v1270_v54  ;;  %v1293_v59 = vsel %vm549_vm1, %v1270_v54, %v1254_v41 }
 0x37a   : > { %v1343_v56 = vadd.f32 %v1342_v46, %v1285_v55  ;;  %v1372_v0 = vadd.f32 %v1371_v47, %v1293_v59  ;;  %v3114_v55 = vld [vmem:[%s4808_s1 + $0x48] sm:$0xff]  ;;  %v3115_v59 = vld [vmem:[%s4808_s1 + $0x50] sm:$0xff] }
 0x37b   : > { %2982 = vmatmul.msk.bf16.gmra.mxu0 %vm435_vm0, %v3114_v55  ;;  %2986 = vmatmul.msk.bf16.gmra.mxu1 %vm435_vm0, %v3114_v55 }
 0x37c   : > { %1400 = vrot.lane.b32.xlu0 %v1343_v56, %s3266_s14  ;;  %v1489_v56 = vpop.f32.mrf.mxu2 }
 0x37d   : > { %v1272_v60 = vpop.permute.xlu0 %1271 }
 0x37e   : > { %v1286_v62 = vsel %vm549_vm1, %v1256_v53, %v1272_v60  ;;  %v1294_v1 = vsel %vm549_vm1, %v1272_v60, %v1256_v53  ;;  %v1388_v53 = vpop.f32.mrf.mxu1 }
 0x37f   : > { %v1345_v63 = vadd.f32 %v1344_v58, %v1286_v62  ;;  %v1374_v4 = vadd.f32 %v1373_v61, %v1294_v1  ;;  %v1520_v61 = vpop.f32.mrf.mxu3 }
 0x380   : > { %v1274_v5 = vpop.permute.xlu2 %1273 }
 0x381   : > { %1402 = vrot.lane.b32.xlu1 %v1345_v63, %s3266_s14 }
 0x384   : > { %1416 = vrot.lane.b32.xlu0 %v1372_v0, %s3266_s14  ;;  %v1491_v60 = vpop.f32.mrf.mxu2 }
 0x388   : > { %v1260_v13 = vpop.permute.xlu2 %1259 }
 0x389   : > { %1418 = vrot.lane.b32.xlu1 %v1374_v4, %s3266_s14 }
 0x38b   : > { %2983 = vmatmul.msk.bf16.gmra.mxu0 %vm435_vm0, %v3115_v59  ;;  %2987 = vmatmul.msk.bf16.gmra.mxu1 %vm435_vm0, %v3115_v59 }
 0x390   : > { %v1258_v6 = vpop.permute.xlu1 %1257  ;;  %v1280_v42 = vpop.permute.xlu2 %1279 }
 0x391   : > { %v1287_v7 = vsel %vm549_vm1, %v1258_v6, %v1274_v5  ;;  %v1295_v8 = vsel %vm549_vm1, %v1274_v5, %v1258_v6  ;;  %v1523_v5 = vpop.f32.mrf.mxu3 }
 0x392   : > { %v1348_v11 = vadd.f32 %v1347_v2, %v1287_v7  ;;  %v1377_v12 = vadd.f32 %v1376_v3, %v1295_v8  ;;  %v1494_v2 = vpop.f32.mrf.mxu2  ;;  %v3116_v8 = vld [vmem:[%s4808_s1 + $0x58] sm:$0xff] }
 0x394   : > { %1420 = vrot.lane.b32.xlu0 %v1377_v12, %s3266_s14  ;;  %1404 = vrot.lane.b32.xlu2 %v1348_v11, %s3266_s14 }
 0x398   : > { %v1276_v16 = vpop.permute.xlu0 %1275  ;;  %v1266_v52 = vpop.permute.xlu2 %1265 }
 0x399   : > { %v1288_v20 = vsel %vm549_vm1, %v1260_v13, %v1276_v16  ;;  %v1296_v21 = vsel %vm549_vm1, %v1276_v16, %v1260_v13 }
 0x39a   : > { %v1350_v24 = vadd.f32 %v1349_v9, %v1288_v20  ;;  %v1379_v25 = vadd.f32 %v1378_v10, %v1296_v21  ;;  %v1496_v20 = vpop.f32.mrf.mxu2 }
 0x39b   : > { %2984 = vmatmul.msk.bf16.gmra.mxu0 %vm435_vm0, %v3116_v8  ;;  %2988 = vmatmul.msk.bf16.gmra.mxu1 %vm435_vm0, %v3116_v8 }
 0x39c   : > { %1422 = vrot.lane.b32.xlu1 %v1379_v25, %s3266_s14  ;;  %1406 = vrot.lane.b32.xlu0 %v1350_v24, %s3266_s14  ;;  %v1525_v24 = vpop.f32.mrf.mxu3 }
 0x3a0   : > { %v1278_v30 = vpop.permute.xlu1 %1277 }
 0x3a1   : > { %v1262_v31 = vpop.permute.xlu0 %1261 }
 0x3a2   : > { %v1289_v32 = vsel %vm549_vm1, %v1262_v31, %v1278_v30  ;;  %v1297_v33 = vsel %vm549_vm1, %v1278_v30, %v1262_v31 }
 0x3a3   : > { %v1353_v36 = vadd.f32 %v1352_v26, %v1289_v32  ;;  %v1382_v37 = vadd.f32 %v1381_v27, %v1297_v33 }
 0x3a5   : > { %1424 = vrot.lane.b32.xlu2 %v1382_v37, %s3266_s14  ;;  %1408 = vrot.lane.b32.xlu1 %v1353_v36, %s3266_s14  ;;  %v1499_v37 = vpop.f32.mrf.mxu2 }
 0x3a8   : > { %v1264_v43 = vpop.permute.xlu1 %1263 }
 0x3a9   : > { %v1290_v44 = vsel %vm549_vm1, %v1264_v43, %v1280_v42  ;;  %v1298_v45 = vsel %vm549_vm1, %v1280_v42, %v1264_v43 }
 0x3aa   : > { %v1355_v48 = vadd.f32 %v1354_v38, %v1290_v44  ;;  %v1384_v49 = vadd.f32 %v1383_v39, %v1298_v45  ;;  %v1528_v38 = vpop.f32.mrf.mxu3 }
 0x3ac   : > { %1426 = vrot.lane.b32.xlu0 %v1384_v49, %s3266_s14 }
 0x3ad   : > { %1410 = vrot.lane.b32.xlu2 %v1355_v48, %s3266_s14  ;;  %v1501_v49 = vpop.f32.mrf.mxu2 }
 0x3b0   : > { %v1282_v15 = vpop.permute.xlu0 %1281 }
 0x3b1   : > { %v1291_v19 = vsel %vm549_vm1, %v1266_v52, %v1282_v15  ;;  %v1299_v22 = vsel %vm549_vm1, %v1282_v15, %v1266_v52 }
 0x3b2   : > { %v1358_v23 = vadd.f32 %v1357_v50, %v1291_v19  ;;  %v1387_v28 = vadd.f32 %v1386_v51, %v1299_v22  ;;  %v1530_v50 = vpop.f32.mrf.mxu3  ;;  %v3117_v51 = vld [vmem:[%s4808_s1 + $0x20] sm:$0xff] }
 0x3b3   : > { %3013 = vmatmul.msk.bf16.vlgmr.msra.gmra.mxu2 %vm435_vm0, %v3117_v51  ;;  %3017 = vmatmul.msk.bf16.vlgmr.msra.gmra.mxu3 %vm435_vm0, %v3117_v51 }
 0x3b4   : > { %1428 = vrot.lane.b32.xlu1 %v1387_v28, %s3266_s14  ;;  %1412 = vrot.lane.b32.xlu0 %v1358_v23, %s3266_s14 }
 0x3b5   : > { %v1504_v29 = vpop.f32.mrf.mxu2 }
 0x3c1   : > { %v1268_v34 = vpop.permute.xlu1 %1267 }
 0x3c9   : > { %v1284_v35 = vpop.permute.xlu1 %1283 }
 0x3ca   : > { %v1292_v41 = vsel %vm549_vm1, %v1268_v34, %v1284_v35  ;;  %v1300_v47 = vsel %vm549_vm1, %v1284_v35, %v1268_v34  ;;  %v1533_v34 = vpop.f32.mrf.mxu3 }
 0x3cb   : > { %v1360_v46 = vadd.f32 %v1359_v40, %v1292_v41  ;;  %v1389_v54 = vadd.f32 %v1388_v53, %v1300_v47 }
 0x3cd   : > { %1414 = vrot.lane.b32.xlu2 %v1360_v46, %s3266_s14 }
 0x3d5   : > { %1430 = vrot.lane.b32.xlu2 %v1389_v54, %s3266_s14 }
 0x3ee   : > { %v1401_v58 = vpop.permute.xlu0 %1400  ;;  %v1405_v11 = vpop.permute.xlu2 %1404 }
 0x3f3   : > { %v1403_v62 = vpop.permute.xlu1 %1402 }
 0x3f6   : > { %v1417_v63 = vpop.permute.xlu0 %1416 }
 0x3f7   : > { %v1432_v0 = vsel %vm549_vm1, %v1401_v58, %v1417_v63  ;;  %v1440_v3 = vsel %vm549_vm1, %v1417_v63, %v1401_v58  ;;  %v3118_v63 = vld [vmem:[%s4808_s1 + $0x28] sm:$0xff] }
 0x3f8   : > { %v1490_v1 = vadd.f32 %v1489_v56, %v1432_v0  ;;  %v1519_v9 = vadd.f32 %v1518_v57, %v1440_v3  ;;  %v1506_v56 = vpop.f32.mrf.mxu2  ;;  %3014 = vmatmul.msk.bf16.gmra.mxu2 %vm435_vm0, %v3118_v63  ;;  %3018 = vmatmul.msk.bf16.gmra.mxu3 %vm435_vm0, %v3118_v63  ;;  %v1636_v0 = vpop.f32.mrf.mxu0  ;;  %v3119_v3 = vld [vmem:[%s4808_s1 + $0x30] sm:$0xff] }
 0x3f9   : > { %v1984_v63 = vld [vmem:[%s4809_s2 + $0x30] sm:$0xff] }
 0x3fa   : > { %1547 = vrot.lane.b32.xlu1 %v1490_v1, %s3266_s14  ;;  %v1985_v1 = vld [vmem:[%s4809_s2 + $0x38] sm:$0xff] }
 0x3fb   : > { %v1419_v4 = vpop.permute.xlu1 %1418 }
 0x3fc   : > { %v1433_v6 = vsel %vm549_vm1, %v1403_v62, %v1419_v4  ;;  %v1441_v10 = vsel %vm549_vm1, %v1419_v4, %v1403_v62  ;;  %v1979_v62 = vld [vmem:[%s4809_s2 + $0x8] sm:$0xff]  ;;  %v1665_v4 = vpop.f32.mrf.mxu1 }
 0x3fd   : > { %v1492_v7 = vadd.f32 %v1491_v60, %v1433_v6  ;;  %v1521_v13 = vadd.f32 %v1520_v61, %v1441_v10  ;;  %v1535_v60 = vpop.f32.mrf.mxu3 }
 0x3ff   : > { %1549 = vrot.lane.b32.xlu2 %v1492_v7, %s3266_s14  ;;  %v1425_v39 = vpop.permute.xlu2 %1424 }
 0x402   : > { %1563 = vrot.lane.b32.xlu1 %v1519_v9, %s3266_s14 }
 0x404   : > { %v1667_v10 = vpop.f32.mrf.mxu1 }
 0x406   : > { %v1421_v12 = vpop.permute.xlu0 %1420 }
 0x407   : > { %v1434_v16 = vsel %vm549_vm1, %v1405_v11, %v1421_v12  ;;  %v1442_v21 = vsel %vm549_vm1, %v1421_v12, %v1405_v11  ;;  %1565 = vrot.lane.b32.xlu2 %v1521_v13, %s3266_s14  ;;  %v1411_v52 = vpop.permute.xlu2 %1410  ;;  %v3120_v13 = vld [vmem:[%s4808_s1 + $0x38] sm:$0xff] }
 0x408   : > { %v1495_v25 = vadd.f32 %v1494_v2, %v1434_v16  ;;  %v1524_v26 = vadd.f32 %v1523_v5, %v1442_v21  ;;  %3015 = vmatmul.msk.bf16.gmra.mxu2 %vm435_vm0, %v3119_v3  ;;  %3019 = vmatmul.msk.bf16.gmra.mxu3 %vm435_vm0, %v3119_v3  ;;  %v1638_v5 = vpop.f32.mrf.mxu0  ;;  %v1983_v3 = vld [vmem:[%s4809_s2 + $0x28] sm:$0xff] }
 0x40a   : > { %1567 = vrot.lane.b32.xlu1 %v1524_v26, %s3266_s14  ;;  %1551 = vrot.lane.b32.xlu0 %v1495_v25, %s3266_s14 }
 0x40e   : > { %v1423_v27 = vpop.permute.xlu1 %1422  ;;  %v1407_v30 = vpop.permute.xlu0 %1406 }
 0x40f   : > { %v1435_v31 = vsel %vm549_vm1, %v1407_v30, %v1423_v27  ;;  %v1443_v32 = vsel %vm549_vm1, %v1423_v27, %v1407_v30 }
 0x410   : > { %v1497_v33 = vadd.f32 %v1496_v20, %v1435_v31  ;;  %v1526_v36 = vadd.f32 %v1525_v24, %v1443_v32  ;;  %v1641_v16 = vpop.f32.mrf.mxu0  ;;  %v1670_v20 = vpop.f32.mrf.mxu1 }
 0x412   : > { %1569 = vrot.lane.b32.xlu2 %v1526_v36, %s3266_s14  ;;  %1553 = vrot.lane.b32.xlu1 %v1497_v33, %s3266_s14 }
 0x417   : > { %v1409_v42 = vpop.permute.xlu1 %1408 }
 0x418   : > { %v1436_v43 = vsel %vm549_vm1, %v1409_v42, %v1425_v39  ;;  %v1444_v44 = vsel %vm549_vm1, %v1425_v39, %v1409_v42  ;;  %3016 = vmatmul.msk.bf16.gmra.mxu2 %vm435_vm0, %v3120_v13  ;;  %3020 = vmatmul.msk.bf16.gmra.mxu3 %vm435_vm0, %v3120_v13  ;;  %v1643_v32 = vpop.f32.mrf.mxu0  ;;  %v1672_v33 = vpop.f32.mrf.mxu1 }
 0x419   : > { %v1500_v45 = vadd.f32 %v1499_v37, %v1436_v43  ;;  %v1529_v48 = vadd.f32 %v1528_v38, %v1444_v44 }
 0x41b   : > { %1571 = vrot.lane.b32.xlu0 %v1529_v48, %s3266_s14  ;;  %1555 = vrot.lane.b32.xlu2 %v1500_v45, %s3266_s14 }
 0x41e   : > { %v1427_v15 = vpop.permute.xlu0 %1426 }
 0x41f   : > { %v1437_v19 = vsel %vm549_vm1, %v1411_v52, %v1427_v15  ;;  %v1445_v22 = vsel %vm549_vm1, %v1427_v15, %v1411_v52 }
 0x420   : > { %v1502_v23 = vadd.f32 %v1501_v49, %v1437_v19  ;;  %v1531_v28 = vadd.f32 %v1530_v50, %v1445_v22  ;;  %v1646_v48 = vpop.f32.mrf.mxu0  ;;  %v1675_v49 = vpop.f32.mrf.mxu1 }
 0x422   : > { %1573 = vrot.lane.b32.xlu1 %v1531_v28, %s3266_s14 }
 0x423   : > { %1557 = vrot.lane.b32.xlu0 %v1502_v23, %s3266_s14 }
 0x426   : > { %v1429_v35 = vpop.permute.xlu1 %1428  ;;  %v1413_v40 = vpop.permute.xlu0 %1412 }
 0x427   : > { %v1438_v41 = vsel %vm549_vm1, %v1413_v40, %v1429_v35  ;;  %v1415_v46 = vpop.permute.xlu2 %1414  ;;  %v1446_v47 = vsel %vm549_vm1, %v1429_v35, %v1413_v40 }
 0x428   : > { %v1505_v53 = vadd.f32 %v1504_v29, %v1438_v41  ;;  %v1534_v54 = vadd.f32 %v1533_v34, %v1446_v47  ;;  %v1648_v29 = vpop.f32.mrf.mxu0  ;;  %v1677_v34 = vpop.f32.mrf.mxu1 }
 0x42a   : > { %1575 = vrot.lane.b32.xlu2 %v1534_v54, %s3266_s14  ;;  %1559 = vrot.lane.b32.xlu1 %v1505_v53, %s3266_s14 }
 0x42f   : > { %v1431_v55 = vpop.permute.xlu2 %1430 }
 0x430   : > { %v1439_v57 = vsel %vm549_vm1, %v1415_v46, %v1431_v55  ;;  %v1447_v59 = vsel %vm549_vm1, %v1431_v55, %v1415_v46  ;;  %v1651_v54 = vpop.f32.mrf.mxu0  ;;  %v1680_v55 = vpop.f32.mrf.mxu1 }
 0x431   : > { %v1507_v58 = vadd.f32 %v1506_v56, %v1439_v57  ;;  %v1536_v61 = vadd.f32 %v1535_v60, %v1447_v59 }
 0x432   : > { %2023 = vperm.xlu1 %3160, %v1985_v1  }
 0x433   : > { %1561 = vrot.lane.b32.xlu0 %v1507_v58, %s3266_s14 }
 0x436   : > { %v1783_v13 = vpop.f32.mrf.mxu2 }
 0x438   : > { %v1653_v1 = vpop.f32.mrf.mxu0 }
 0x43b   : > { %1577 = vrot.lane.b32.xlu0 %v1536_v61, %s3266_s14 }
 0x443   : > { %1993 = vperm.xlu0 %3159, %v1979_v62  }
 0x459   : > { %v1550_v2 = vpop.permute.xlu2 %1549 }
 0x461   : > { %v1566_v6 = vpop.permute.xlu2 %1565 }
 0x462   : > { %v1580_v7 = vsel %vm549_vm1, %v1550_v2, %v1566_v6  ;;  %v1588_v9 = vsel %vm549_vm1, %v1566_v6, %v1550_v2 }
 0x463   : > { %v1639_v8 = vadd.f32 %v1638_v5, %v1580_v7  ;;  %v1668_v12 = vadd.f32 %v1667_v10, %v1588_v9  ;;  %v3121_v5 = vld [vmem:[%s4808_s1] sm:$0xff]  ;;  %v1682_v7 = vpop.f32.mrf.mxu1  ;;  %v3122_v9 = vld [vmem:[%s4808_s1 + $0x8] sm:$0xff] }
 0x464   : > { %3037 = vmatmul.msk.bf16.vlgmr.msrb.gmra.mxu0 %vm435_vm0, %v3121_v5  ;;  %3041 = vmatmul.msk.bf16.vlgmr.msrb.gmra.mxu1 %vm435_vm0, %v3121_v5 }
 0x465   : > { %1696 = vrot.lane.b32.xlu0 %v1639_v8, %s3266_s14 }
 0x46c   : > { %v1548_v11 = vpop.permute.xlu1 %1547  ;;  %v1570_v38 = vpop.permute.xlu2 %1569 }
 0x46d   : > { %1712 = vrot.lane.b32.xlu0 %v1668_v12, %s3266_s14  ;;  %v3123_v12 = vld [vmem:[%s4808_s1 + $0x10] sm:$0xff] }
 0x474   : > { %v1564_v21 = vpop.permute.xlu1 %1563  ;;  %3038 = vmatmul.msk.bf16.gmra.mxu0 %vm435_vm0, %v3122_v9  ;;  %3042 = vmatmul.msk.bf16.gmra.mxu1 %vm435_vm0, %v3122_v9 }
 0x475   : > { %v1579_v24 = vsel %vm549_vm1, %v1548_v11, %v1564_v21  ;;  %v1587_v26 = vsel %vm549_vm1, %v1564_v21, %v1548_v11  ;;  %v1556_v51 = vpop.permute.xlu2 %1555 }
 0x476   : > { %v1637_v25 = vadd.f32 %v1636_v0, %v1579_v24  ;;  %v1666_v36 = vadd.f32 %v1665_v4, %v1587_v26  ;;  %v1785_v26 = vpop.f32.mrf.mxu2 }
 0x478   : > { %1694 = vrot.lane.b32.xlu2 %v1637_v25, %s3266_s14 }
 0x47c   : > { %v1568_v27 = vpop.permute.xlu1 %1567  ;;  %v1552_v30 = vpop.permute.xlu0 %1551 }
 0x47d   : > { %v1581_v31 = vsel %vm549_vm1, %v1552_v30, %v1568_v27  ;;  %v1589_v39 = vsel %vm549_vm1, %v1568_v27, %v1552_v30 }
 0x47e   : > { %v1642_v37 = vadd.f32 %v1641_v16, %v1581_v31  ;;  %v1671_v44 = vadd.f32 %v1670_v20, %v1589_v39  ;;  %v1812_v16 = vpop.f32.mrf.mxu3  ;;  %v1788_v39 = vpop.f32.mrf.mxu2 }
 0x480   : > { %1710 = vrot.lane.b32.xlu2 %v1666_v36, %s3266_s14  ;;  %1698 = vrot.lane.b32.xlu1 %v1642_v37, %s3266_s14  ;;  %v3124_v37 = vld [vmem:[%s4808_s1 + $0x18] sm:$0xff] }
 0x484   : > { %v1554_v42 = vpop.permute.xlu1 %1553  ;;  %v1576_v56 = vpop.permute.xlu2 %1575  ;;  %3039 = vmatmul.msk.bf16.gmra.mxu0 %vm435_vm0, %v3123_v12  ;;  %3043 = vmatmul.msk.bf16.gmra.mxu1 %vm435_vm0, %v3123_v12 }
 0x485   : > { %v1590_v43 = vsel %vm549_vm1, %v1570_v38, %v1554_v42  ;;  %v1582_v50 = vsel %vm549_vm1, %v1554_v42, %v1570_v38 }
 0x486   : > { %v1673_v45 = vadd.f32 %v1672_v33, %v1590_v43  ;;  %v1644_v15 = vadd.f32 %v1643_v32, %v1582_v50  ;;  %v1814_v31 = vpop.f32.mrf.mxu3 }
 0x488   : > { %1714 = vrot.lane.b32.xlu2 %v1671_v44, %s3266_s14  ;;  %1716 = vrot.lane.b32.xlu0 %v1673_v45, %s3266_s14 }
 0x48d   : > { %v1572_v52 = vpop.permute.xlu0 %1571 }
 0x48e   : > { %v1583_v19 = vsel %vm549_vm1, %v1556_v51, %v1572_v52  ;;  %v1591_v22 = vsel %vm549_vm1, %v1572_v52, %v1556_v51  ;;  %v1817_v42 = vpop.f32.mrf.mxu3 }
 0x48f   : > { %v1647_v23 = vadd.f32 %v1646_v48, %v1583_v19  ;;  %v1676_v28 = vadd.f32 %v1675_v49, %v1591_v22  ;;  %v1790_v48 = vpop.f32.mrf.mxu2 }
 0x490   : > { %1700 = vrot.lane.b32.xlu2 %v1644_v15, %s3266_s14 }
 0x491   : > { %1718 = vrot.lane.b32.xlu1 %v1676_v28, %s3266_s14  ;;  %1702 = vrot.lane.b32.xlu0 %v1647_v23, %s3266_s14 }
 0x494   : > { %v1574_v35 = vpop.permute.xlu1 %1573  ;;  %3040 = vmatmul.msk.bf16.gmra.mxu0 %vm435_vm0, %v3124_v37  ;;  %3044 = vmatmul.msk.bf16.gmra.mxu1 %vm435_vm0, %v3124_v37 }
 0x495   : > { %v1558_v40 = vpop.permute.xlu0 %1557 }
 0x496   : > { %v1584_v41 = vsel %vm549_vm1, %v1558_v40, %v1574_v35  ;;  %v1592_v46 = vsel %vm549_vm1, %v1574_v35, %v1558_v40  ;;  %v1819_v49 = vpop.f32.mrf.mxu3 }
 0x497   : > { %v1649_v47 = vadd.f32 %v1648_v29, %v1584_v41  ;;  %v1678_v53 = vadd.f32 %v1677_v34, %v1592_v46  ;;  %v1793_v28 = vpop.f32.mrf.mxu2 }
 0x499   : > { %1720 = vrot.lane.b32.xlu2 %v1678_v53, %s3266_s14  ;;  %1704 = vrot.lane.b32.xlu1 %v1649_v47, %s3266_s14 }
 0x49c   : > { %v1560_v57 = vpop.permute.xlu1 %1559 }
 0x49d   : > { %v1585_v58 = vsel %vm549_vm1, %v1560_v57, %v1576_v56  ;;  %v1593_v59 = vsel %vm549_vm1, %v1576_v56, %v1560_v57 }
 0x49e   : > { %v1652_v60 = vadd.f32 %v1651_v54, %v1585_v58  ;;  %v1681_v61 = vadd.f32 %v1680_v55, %v1593_v59  ;;  %v1822_v29 = vpop.f32.mrf.mxu3 }
 0x49f   : > { %v1795_v53 = vpop.f32.mrf.mxu2 }
 0x4a0   : > { %1722 = vrot.lane.b32.xlu0 %v1681_v61, %s3266_s14 }
 0x4a1   : > { %1706 = vrot.lane.b32.xlu2 %v1652_v60, %s3266_s14 }
 0x4a4   : > { %v4181_v45 = vpop.permute.xlu1 %2023 }
 0x4a5   : > { %v1562_v62 = vpop.permute.xlu0 %1561 }
 0x4a6   : > { %v1824_v54 = vpop.f32.mrf.mxu3 }
 0x4a7   : > { %v1798_v61 = vpop.f32.mrf.mxu2 }
 0x4a9   : > { %2018 = vperm.xlu2 %3158, %v1984_v63  }
 0x4ad   : > { %v1578_v0 = vpop.permute.xlu0 %1577 }
 0x4ae   : > { %v1586_v2 = vsel %vm549_vm1, %v1562_v62, %v1578_v0  ;;  %v1594_v6 = vsel %vm549_vm1, %v1578_v0, %v1562_v62  ;;  %v1827_v62 = vpop.f32.mrf.mxu3 }
 0x4af   : > { %v1654_v4 = vadd.f32 %v1653_v1, %v1586_v2  ;;  %v1683_v8 = vadd.f32 %v1682_v7, %v1594_v6 }
 0x4b1   : > { %1708 = vrot.lane.b32.xlu1 %v1654_v4, %s3266_s14  ;;  %2013 = vperm.xlu2 %3158, %v1983_v3  }
 0x4b5   : > { %v4157_v10 = vpop.permute.xlu0 %1993 }
 0x4b9   : > { %1724 = vrot.lane.b32.xlu1 %v1683_v8, %s3266_s14 }
 0x4d2   : > { %v1695_v11 = vpop.permute.xlu2 %1694 }
 0x4d7   : > { %v1697_v20 = vpop.permute.xlu0 %1696 }
 0x4da   : > { %v1711_v21 = vpop.permute.xlu2 %1710 }
 0x4db   : > { %v1726_v24 = vsel %vm549_vm1, %v1695_v11, %v1711_v21  ;;  %v1734_v27 = vsel %vm549_vm1, %v1711_v21, %v1695_v11  ;;  %v1980_v11 = vld [vmem:[%s4809_s2 + $0x10] sm:$0xff] }
 0x4dc   : > { %v1784_v25 = vadd.f32 %v1783_v13, %v1726_v24  ;;  %v1813_v36 = vadd.f32 %v1812_v16, %v1734_v27  ;;  %v1800_v13 = vpop.f32.mrf.mxu2  ;;  %v1829_v24 = vpop.f32.mrf.mxu3  ;;  %v1981_v27 = vld [vmem:[%s4809_s2 + $0x18] sm:$0xff] }
 0x4de   : > { %1840 = vrot.lane.b32.xlu0 %v1784_v25, %s3266_s14 }
 0x4df   : > { %v1713_v30 = vpop.permute.xlu0 %1712 }
 0x4e0   : > { %v1727_v32 = vsel %vm549_vm1, %v1697_v20, %v1713_v30  ;;  %v1735_v38 = vsel %vm549_vm1, %v1713_v30, %v1697_v20 }
 0x4e1   : > { %v1786_v33 = vadd.f32 %v1785_v26, %v1727_v32  ;;  %v1815_v43 = vadd.f32 %v1814_v31, %v1735_v38  ;;  %v1982_v26 = vld [vmem:[%s4809_s2 + $0x20] sm:$0xff]  ;;  %v1929_v30 = vpop.f32.mrf.mxu0  ;;  %v1958_v31 = vpop.f32.mrf.mxu1 }
 0x4e2   : > { %v1715_v44 = vpop.permute.xlu2 %1714 }
 0x4e3   : > { %1842 = vrot.lane.b32.xlu1 %v1786_v33, %s3266_s14 }
 0x4e6   : > { %1856 = vrot.lane.b32.xlu0 %v1813_v36, %s3266_s14 }
 0x4e9   : > { %v1931_v32 = vpop.f32.mrf.mxu0  ;;  %v1960_v33 = vpop.f32.mrf.mxu1 }
 0x4ea   : > { %v1701_v50 = vpop.permute.xlu2 %1700 }
 0x4eb   : > { %1858 = vrot.lane.b32.xlu1 %v1815_v43, %s3266_s14 }
 0x4f1   : > { %v4228_v37 = vpop.f32.mrf.mxu0  ;;  %v4230_v38 = vpop.f32.mrf.mxu1 }
 0x4f2   : > { %v1699_v52 = vpop.permute.xlu1 %1698 }
 0x4f3   : > { %v1721_v55 = vpop.permute.xlu2 %1720  ;;  %v1728_v5 = vsel %vm549_vm1, %v1699_v52, %v1715_v44  ;;  %v1736_v6 = vsel %vm549_vm1, %v1715_v44, %v1699_v52 }
 0x4f4   : > { %v1789_v7 = vadd.f32 %v1788_v39, %v1728_v5  ;;  %v1818_v8 = vadd.f32 %v1817_v42, %v1736_v6 }
 0x4f9   : > { %v4232_v43 = vpop.f32.mrf.mxu0  ;;  %v4234_v44 = vpop.f32.mrf.mxu1 }
 0x4fa   : > { %v1717_v51 = vpop.permute.xlu0 %1716 }
 0x4fb   : > { %v1729_v15 = vsel %vm549_vm1, %v1701_v50, %v1717_v51  ;;  %v1737_v19 = vsel %vm549_vm1, %v1717_v51, %v1701_v50  ;;  %v1707_v63 = vpop.permute.xlu2 %1706 }
 0x4fc   : > { %v1791_v22 = vadd.f32 %v1790_v48, %v1729_v15  ;;  %v1820_v23 = vadd.f32 %v1819_v49, %v1737_v19 }
 0x4fe   : > { %1862 = vrot.lane.b32.xlu1 %v1820_v23, %s3266_s14  ;;  %1846 = vrot.lane.b32.xlu0 %v1791_v22, %s3266_s14 }
 0x501   : > { %v4238_v51 = vpop.f32.mrf.mxu0  ;;  %v4240_v52 = vpop.f32.mrf.mxu1 }
 0x503   : > { %v1719_v34 = vpop.permute.xlu1 %1718  ;;  %v1703_v35 = vpop.permute.xlu0 %1702 }
 0x504   : > { %v1730_v40 = vsel %vm549_vm1, %v1703_v35, %v1719_v34  ;;  %v1738_v41 = vsel %vm549_vm1, %v1719_v34, %v1703_v35  ;;  %v2019_v49 = vpop.permute.xlu2 %2018 }
 0x505   : > { %v1794_v46 = vadd.f32 %v1793_v28, %v1730_v40  ;;  %v1823_v47 = vadd.f32 %v1822_v29, %v1738_v41 }
 0x507   : > { %1864 = vrot.lane.b32.xlu1 %v1823_v47, %s3266_s14  ;;  %1848 = vrot.lane.b32.xlu0 %v1794_v46, %s3266_s14 }
 0x509   : > { %v1941_v41 = vpop.f32.mrf.mxu0  ;;  %v1970_v46 = vpop.f32.mrf.mxu1 }
 0x50b   : > { %v1705_v56 = vpop.permute.xlu1 %1704 }
 0x50c   : > { %v1731_v57 = vsel %vm549_vm1, %v1705_v56, %v1721_v55  ;;  %v1739_v58 = vsel %vm549_vm1, %v1721_v55, %v1705_v56  ;;  %v2014_v19 = vpop.permute.xlu2 %2013 }
 0x50d   : > { %v1796_v59 = vadd.f32 %v1795_v53, %v1731_v57  ;;  %v1825_v60 = vadd.f32 %v1824_v54, %v1739_v58 }
 0x50f   : > { %1866 = vrot.lane.b32.xlu1 %v1825_v60, %s3266_s14  ;;  %1850 = vrot.lane.b32.xlu2 %v1796_v59, %s3266_s14 }
 0x512   : > { %v1723_v0 = vpop.permute.xlu0 %1722 }
 0x513   : > { %v1732_v1 = vsel %vm549_vm1, %v1707_v63, %v1723_v0  ;;  %v1740_v2 = vsel %vm549_vm1, %v1723_v0, %v1707_v63  ;;  %v4263_v63 = vshrl.u32 %v547_v14, 7 }
 0x514   : > { %v1799_v3 = vadd.f32 %v1798_v61, %v1732_v1  ;;  %v1828_v4 = vadd.f32 %v1827_v62, %v1740_v2  ;;  %v1944_v1 = vpop.f32.mrf.mxu0 }
 0x515   : > { %vm2076_vm2 = vcmp.lt.s32.totalorder %v4263_v63, 7  ;;  %vm2125_vm3 = vcmp.lt.s32.totalorder %v4263_v63, 6 }
 0x516   : > { %1852 = vrot.lane.b32.xlu0 %v1799_v3, %s3266_s14 }
 0x517   : > { %1868 = vrot.lane.b32.xlu1 %v1828_v4, %s3266_s14  ;;  %v1973_v4 = vpop.f32.mrf.mxu1 }
 0x51e   : > { %1844 = vrot.lane.b32.xlu0 %v1789_v7, %s3266_s14 }
 0x51f   : > { %1860 = vrot.lane.b32.xlu1 %v1818_v8, %s3266_s14 }
 0x523   : > { %v1709_v9 = vpop.permute.xlu1 %1708 }
 0x526   : > { %1998 = vperm.xlu0 %3159, %v1980_v11  }
 0x52b   : > { %v1725_v12 = vpop.permute.xlu1 %1724 }
 0x52c   : > { %v1733_v16 = vsel %vm549_vm1, %v1709_v9, %v1725_v12  ;;  %v1741_v21 = vsel %vm549_vm1, %v1725_v12, %v1709_v9 }
 0x52d   : > { %v1801_v20 = vadd.f32 %v1800_v13, %v1733_v16  ;;  %v1830_v25 = vadd.f32 %v1829_v24, %v1741_v21 }
 0x52f   : > { %1854 = vrot.lane.b32.xlu2 %v1801_v20, %s3266_s14 }
 0x537   : > { %1870 = vrot.lane.b32.xlu2 %v1830_v25, %s3266_s14 }
 0x53f   : > { %2008 = vperm.xlu2 %3158, %v1982_v26  }
 0x547   : > { %2003 = vperm.xlu2 %3158, %v1981_v27  }
 0x550   : > { %v1841_v39 = vpop.permute.xlu0 %1840 }
 0x555   : > { %v1843_v36 = vpop.permute.xlu1 %1842 }
 0x558   : > { %v1857_v48 = vpop.permute.xlu0 %1856 }
 0x559   : > { %v1872_v29 = vsel %vm549_vm1, %v1841_v39, %v1857_v48  ;;  %v1880_v34 = vsel %vm549_vm1, %v1857_v48, %v1841_v39 }
 0x55a   : > { %v1930_v47 = vadd.f32 %v1929_v30, %v1872_v29  ;;  %v1959_v53 = vadd.f32 %v1958_v31, %v1880_v34 }
 0x55c   : > { %v2026_v59 = vadd.f32 %v3555_v18, %v1930_v47  ;;  %v2027_v60 = vadd.f32 %v3555_v18, %v1959_v53  ;;  %v1975_v47 = vpop.f32.mrf.mxu1 }
 0x55d   : > { %v1859_v42 = vpop.permute.xlu1 %1858 }
 0x55e   : > { %v1873_v23 = vsel %vm549_vm1, %v1843_v36, %v1859_v42  ;;  %v1881_v28 = vsel %vm549_vm1, %v1859_v42, %v1843_v36  ;;  %v2042_v2 = vmax.f32 %v2026_v59, 0.0  ;;  %v2043_v3 = vmax.f32 %v2027_v60, 0.0 }
 0x55f   : > { %v1932_v35 = vadd.f32 %v1931_v32, %v1873_v23  ;;  %v1961_v40 = vadd.f32 %v1960_v33, %v1881_v28 }
 0x560   : > { %v2058_v20 = vrot.slane %v2042_v2, 1  ;;  %v2059_v21 = vrot.slane %v2043_v3, 1 }
 0x561   : > { %v4253_v55 = vadd.f32 %v4157_v10, %v1932_v35  ;;  %v4256_v56 = vadd.f32 %v4157_v10, %v1961_v40 }
 0x563   : > { %v2044_v61 = vmax.f32 %v4253_v55, 0.0  ;;  %v2045_v62 = vmax.f32 %v4256_v56, 0.0 }
 0x565   : > { %v4271_v18 = vrot.slane %v2044_v61, 1  ;;  %v4275_v6 = vrot.slane %v2045_v62, 1 }
 0x567   : > { %v2089_v26 = vsel %vm2076_vm2, %v2058_v20, %v4271_v18  ;;  %v2090_v27 = vsel %vm2076_vm2, %v2059_v21, %v4275_v6 }
 0x568   : > { %v4288_v39 = vmax.f32 %v2042_v2, %v2089_v26  ;;  %v4290_v42 = vmax.f32 %v2043_v3, %v2090_v27 }
 0x569   : > { %v1851_v57 = vpop.permute.xlu2 %1850 }
 0x570   : > { %v4236_v50 = vpop.permute.xlu1 %1862  ;;  %v4242_v15 = vpop.permute.xlu0 %1846 }
 0x571   : > { %v1875_v60 = vsel %vm549_vm1, %v4242_v15, %v4236_v50 }
 0x579   : > { %v1865_v22 = vpop.permute.xlu1 %1864  ;;  %v1849_v54 = vpop.permute.xlu0 %1848 }
 0x57a   : > { %v1884_v35 = vsel %vm549_vm1, %v1865_v22, %v1849_v54 }
 0x581   : > { %v1867_v58 = vpop.permute.xlu1 %1866 }
 0x582   : > { %v1877_v0 = vsel %vm549_vm1, %v1851_v57, %v1867_v58  ;;  %v1885_v10 = vsel %vm549_vm1, %v1867_v58, %v1851_v57 }
 0x583   : > { %v1942_v8 = vadd.f32 %v1941_v41, %v1877_v0  ;;  %v1971_v9 = vadd.f32 %v1970_v46, %v1885_v10  ;;  %v1946_v46 = vpop.f32.mrf.mxu0  ;;  %v2109_v0 = vrot.slane %v4288_v39, 2 }
 0x585   : > { %v2036_v30 = vadd.f32 %v2014_v19, %v1942_v8  ;;  %v2037_v31 = vadd.f32 %v2014_v19, %v1971_v9  ;;  %v1876_v19 = vsel %vm549_vm1, %v1849_v54, %v1865_v22  ;;  %v2110_v22 = vrot.slane %v4290_v42, 2 }
 0x586   : > { %v1940_v3 = vadd.f32 %v4238_v51, %v1876_v19  ;;  %v1937_v51 = vadd.f32 %v4232_v43, %v1875_v60 }
 0x587   : > { %v2053_v28 = vmax.f32 %v2037_v31, 0.0 }
 0x588   : > { %v1853_v5 = vpop.permute.xlu0 %1852 }
 0x589   : > { %v1869_v14 = vpop.permute.xlu1 %1868  ;;  %v1855_v7 = vpop.permute.xlu2 %1854  ;;  %v2069_v10 = vrot.slane %v2053_v28, 1 }
 0x58a   : > { %v1878_v11 = vsel %vm549_vm1, %v1853_v5, %v1869_v14  ;;  %v1886_v12 = vsel %vm549_vm1, %v1869_v14, %v1853_v5 }
 0x58b   : > { %v1945_v13 = vadd.f32 %v1944_v1, %v1878_v11  ;;  %v1974_v16 = vadd.f32 %v1973_v4, %v1886_v12  ;;  %v1969_v4 = vadd.f32 %v4240_v52, %v1884_v35 }
 0x58d   : > { %v2038_v24 = vadd.f32 %v2019_v49, %v1945_v13  ;;  %v2039_v25 = vadd.f32 %v2019_v49, %v1974_v16  ;;  %v2052_v49 = vmax.f32 %v2036_v30, 0.0 }
 0x58f   : > { %v2054_v32 = vmax.f32 %v2038_v24, 0.0  ;;  %v2055_v33 = vmax.f32 %v2039_v25, 0.0  ;;  %v2068_v54 = vrot.slane %v2052_v49, 1 }
 0x590   : > { %v1845_v36 = vpop.permute.xlu0 %1844 }
 0x591   : > { %v1861_v48 = vpop.permute.xlu1 %1860  ;;  %v1871_v23 = vpop.permute.xlu2 %1870  ;;  %v2070_v40 = vrot.slane %v2054_v32, 1  ;;  %v2071_v41 = vrot.slane %v2055_v33, 1 }
 0x592   : > { %v1879_v29 = vsel %vm549_vm1, %v1855_v7, %v1871_v23  ;;  %v1887_v34 = vsel %vm549_vm1, %v1871_v23, %v1855_v7  ;;  %v1874_v53 = vsel %vm549_vm1, %v1845_v36, %v1861_v48  ;;  %v1882_v57 = vsel %vm549_vm1, %v1861_v48, %v1845_v36 }
 0x593   : > { %v1947_v58 = vadd.f32 %v1946_v46, %v1879_v29  ;;  %v1976_v59 = vadd.f32 %v1975_v47, %v1887_v34  ;;  %v1935_v5 = vadd.f32 %v4228_v37, %v1874_v53  ;;  %v1964_v14 = vadd.f32 %v4230_v38, %v1882_v57 }
 0x594   : > { %v2079_v7 = vsel %vm2076_vm2, %v2068_v54, %v2070_v40  ;;  %v2080_v8 = vsel %vm2076_vm2, %v2069_v10, %v2071_v41 }
 0x595   : > { %v2040_v1 = vadd.f32 %v4181_v45, %v1947_v58  ;;  %v2041_v2 = vadd.f32 %v4181_v45, %v1976_v59  ;;  %v1883_v45 = vsel %vm549_vm1, %v4236_v50, %v4242_v15  ;;  %v2103_v26 = vmax.f32 %v2052_v49, %v2079_v7 }
 0x596   : > { %v2104_v27 = vmax.f32 %v2053_v28, %v2080_v8  ;;  %v1966_v29 = vadd.f32 %v4234_v44, %v1883_v45 }
 0x597   : > { %v2056_v9 = vmax.f32 %v2040_v1, 0.0  ;;  %v2057_v11 = vmax.f32 %v2041_v2, 0.0 }
 0x598   : > { %v1999_v12 = vpop.permute.xlu0 %1998  ;;  %v2120_v57 = vrot.slane %v2104_v27, 2 }
 0x599   : > { %v4325_v52 = vadd.f32 %v1999_v12, %v1935_v5  ;;  %v4327_v37 = vadd.f32 %v1999_v12, %v1964_v14  ;;  %v2009_v38 = vpop.permute.xlu2 %2008  ;;  %v2072_v13 = vrot.slane %v2056_v9, 1  ;;  %v2073_v16 = vrot.slane %v2057_v11, 1 }
 0x59a   : > { %v2034_v24 = vadd.f32 %v2009_v38, %v1940_v3  ;;  %v2035_v25 = vadd.f32 %v2009_v38, %v1969_v4 }
 0x59b   : > { %v2046_v30 = vmax.f32 %v4325_v52, 0.0  ;;  %v2047_v31 = vmax.f32 %v4327_v37, 0.0  ;;  %v2077_v50 = vsel %vm2076_vm2, %v2070_v40, %v2072_v13  ;;  %v2078_v43 = vsel %vm2076_vm2, %v2071_v41, %v2073_v16 }
 0x59c   : > { %v2091_v15 = vsel %vm2076_vm2, %v2072_v13, %v2058_v20  ;;  %v2092_v36 = vsel %vm2076_vm2, %v2073_v16, %v2059_v21  ;;  %v2105_v48 = vmax.f32 %v2054_v32, %v2077_v50  ;;  %v2106_v23 = vmax.f32 %v2055_v33, %v2078_v43 }
 0x59d   : > { %v2107_v49 = vmax.f32 %v2056_v9, %v2091_v15  ;;  %v2108_v28 = vmax.f32 %v2057_v11, %v2092_v36  ;;  %v2050_v34 = vmax.f32 %v2034_v24, 0.0  ;;  %v2051_v19 = vmax.f32 %v2035_v25, 0.0 }
 0x59e   : > { %v2062_v41 = vrot.slane %v2046_v30, 1  ;;  %v2063_v20 = vrot.slane %v2047_v31, 1  ;;  %v2121_v46 = vrot.slane %v2105_v48, 2  ;;  %v2119_v21 = vrot.slane %v2103_v26, 2 }
 0x59f   : > { %v2123_v35 = vrot.slane %v2107_v49, 2  ;;  %v2124_v40 = vrot.slane %v2108_v28, 2  ;;  %v2066_v32 = vrot.slane %v2050_v34, 1  ;;  %v2067_v33 = vrot.slane %v2051_v19, 1 }
 0x5a0   : > { %v2122_v47 = vrot.slane %v2106_v23, 2  ;;  %v2087_v3 = vsel %vm2076_vm2, %v4271_v18, %v2062_v41  ;;  %v2088_v4 = vsel %vm2076_vm2, %v4275_v6, %v2063_v20 }
 0x5a1   : > { %v2140_v44 = vsel %vm2125_vm3, %v2123_v35, %v2109_v0  ;;  %v2141_v53 = vsel %vm2125_vm3, %v2124_v40, %v2110_v22  ;;  %v2004_v58 = vpop.permute.xlu2 %2003  ;;  %v2081_v1 = vsel %vm2076_vm2, %v2066_v32, %v2068_v54  ;;  %v2082_v2 = vsel %vm2076_vm2, %v2067_v33, %v2069_v10 }
 0x5a2   : > { %v4353_v59 = vmax.f32 %v2107_v49, %v2140_v44  ;;  %v4355_v60 = vmax.f32 %v2108_v28, %v2141_v53  ;;  %v2101_v5 = vmax.f32 %v2050_v34, %v2081_v1  ;;  %v2102_v14 = vmax.f32 %v2051_v19, %v2082_v2 }
 0x5a3   : > { %v2032_v7 = vadd.f32 %v2004_v58, %v1937_v51  ;;  %v2033_v8 = vadd.f32 %v2004_v58, %v1966_v29  ;;  %v2128_v54 = vsel %vm2125_vm3, %v2119_v21, %v2121_v46  ;;  %v2129_v12 = vsel %vm2125_vm3, %v2120_v57, %v2122_v47 }
 0x5a4   : > { %v3161_v9 = vpack.i.bf16 %v4355_v60, %v4353_v59  ;;  %v2117_v11 = vrot.slane %v2101_v5, 2  ;;  %v2118_v10 = vrot.slane %v2102_v14, 2  ;;  %v4373_v18 = vmax.f32 %v2103_v26, %v2128_v54 }
 0x5a5   : > { %v2048_v45 = vmax.f32 %v2032_v7, 0.0  ;;  %v2049_v38 = vmax.f32 %v2033_v8, 0.0  ;;  %v4376_v6 = vmax.f32 %v2104_v27, %v2129_v12  ;;  %v2126_v51 = vsel %vm2125_vm3, %v2121_v46, %v2123_v35 }
 0x5a6   : > { %3162 = vrot.lane.b32.xlu1 %v3161_v9, %s3266_s14  ;;  %v2130_v13 = vsel %vm2125_vm3, %v2117_v11, %v2119_v21  ;;  %v2131_v16 = vsel %vm2125_vm3, %v2118_v10, %v2120_v57  ;;  %v2127_v24 = vsel %vm2125_vm3, %v2122_v47, %v2124_v40  ;;  %v2154_v25 = vmax.f32 %v2105_v48, %v2126_v51 }
 0x5a7   : > { %v4386_v26 = vmax.f32 %v2101_v5, %v2130_v13  ;;  %v4388_v50 = vmax.f32 %v2102_v14, %v2131_v16  ;;  %v2064_v43 = vrot.slane %v2048_v45, 1  ;;  %v2065_v27 = vrot.slane %v2049_v38, 1 }
 0x5a8   : > { %v2095_v15 = vmax.f32 %v2044_v61, %v2087_v3  ;;  %v2096_v36 = vmax.f32 %v2045_v62, %v2088_v4  ;;  %v3181_v49 = vpack.i.bf16 %v4376_v6, %v4373_v18  ;;  %v2155_v28 = vmax.f32 %v2106_v23, %v2127_v24 }
 0x5a9   : > { %v2083_v29 = vsel %vm2076_vm2, %v2064_v43, %v2066_v32  ;;  %v2084_v48 = vsel %vm2076_vm2, %v2065_v27, %v2067_v33  ;;  %v2085_v34 = vsel %vm2076_vm2, %v2062_v41, %v2064_v43  ;;  %v2086_v55 = vsel %vm2076_vm2, %v2063_v20, %v2065_v27 }
 0x5aa   : > { %v2097_v56 = vmax.f32 %v2046_v30, %v2085_v34  ;;  %v2098_v61 = vmax.f32 %v2047_v31, %v2086_v55  ;;  %v2099_v62 = vmax.f32 %v2048_v45, %v2083_v29  ;;  %v2100_v23 = vmax.f32 %v2049_v38, %v2084_v48  ;;  %3182 = vrot.lane.b32.xlu0 %v3181_v49, %s3266_s14 }
 0x5ab   : > { %v3171_v19 = vpack.i.bf16 %v2155_v28, %v2154_v25  ;;  %v3166_v35 = vpack.i.bf16 %v4388_v50, %v4386_v26  ;;  %v2111_v32 = vrot.slane %v2095_v15, 2  ;;  %v2112_v20 = vrot.slane %v2096_v36, 2 }
 0x5ac   : > { %v2113_v40 = vrot.slane %v2097_v56, 2  ;;  %v2114_v46 = vrot.slane %v2098_v61, 2  ;;  %v2115_v41 = vrot.slane %v2099_v62, 2  ;;  %v2116_v21 = vrot.slane %v2100_v23, 2 }
 0x5ad   : > { %3172 = vrot.lane.b32.xlu2 %v3171_v19, %s3266_s14  ;;  %v2138_v14 = vsel %vm2125_vm3, %v2109_v0, %v2111_v32  ;;  %v2139_v7 = vsel %vm2125_vm3, %v2110_v22, %v2112_v20 }
 0x5ae   : > { %3167 = vrot.lane.b32.xlu1 %v3166_v35, %s3266_s14  ;;  %v2132_v52 = vsel %vm2125_vm3, %v2115_v41, %v2117_v11  ;;  %v2133_v37 = vsel %vm2125_vm3, %v2116_v21, %v2118_v10  ;;  %v2134_v30 = vsel %vm2125_vm3, %v2113_v40, %v2115_v41  ;;  %v2135_v31 = vsel %vm2125_vm3, %v2114_v46, %v2116_v21 }
 0x5af   : > { %v2148_v33 = vmax.f32 %v2099_v62, %v2132_v52  ;;  %v2149_v47 = vmax.f32 %v2100_v23, %v2133_v37  ;;  %v4421_v44 = vmax.f32 %v2097_v56, %v2134_v30  ;;  %v4423_v53 = vmax.f32 %v2098_v61, %v2135_v31 }
 0x5b0   : > { %v2136_v57 = vsel %vm2125_vm3, %v2111_v32, %v2113_v40  ;;  %v2137_v58 = vsel %vm2125_vm3, %v2112_v20, %v2114_v46  ;;  %v2142_v8 = vmax.f32 %v4288_v39, %v2138_v14  ;;  %v2143_v9 = vmax.f32 %v4290_v42, %v2139_v7 }
 0x5b1   : > { %v3186_v1 = vpack.i.bf16 %v4423_v53, %v4421_v44  ;;  %v3176_v2 = vpack.i.bf16 %v2149_v47, %v2148_v33  ;;  %v4431_v3 = vmax.f32 %v2095_v15, %v2136_v57  ;;  %v4433_v4 = vmax.f32 %v2096_v36, %v2137_v58 }
 0x5b2   : > { %v3196_v54 = vpack.i.bf16 %v2143_v9, %v2142_v8 }
 0x5b3   : > { %3187 = vrot.lane.b32.xlu0 %v3186_v1, %s3266_s14  ;;  %v3191_v5 = vpack.i.bf16 %v4433_v4, %v4431_v3 }
 0x5b5   : > { %3177 = vrot.lane.b32.xlu2 %v3176_v2, %s3266_s14 }
 0x5b6   : > { %3192 = vrot.lane.b32.xlu1 %v3191_v5, %s3266_s14 }
 0x5bd   : > { %3197 = vrot.lane.b32.xlu2 %v3196_v54, %s3266_s14  ;;  %s332_s14 = scalar_lea.vmem %s4813_s6, %s3068_s8 }
 0x607   : > { %v3173_v11 = vpop.permute.xlu2 %3172 }
 0x608   : > { %v3175_v10 = vunpack.i.h.bf16 %v3173_v11  ;;  %v3174_v12 = vunpack.i.l.bf16 %v3173_v11 }
 0x60a   : > { %v2196_v0 = vsel %vm549_vm1, %v3174_v12, %v3175_v10  ;;  %v2204_v63 = vsel %vm549_vm1, %v3175_v10, %v3174_v12 }
 0x60b   : > { %v4455_v22 = vmax.f32 %v2154_v25, %v2196_v0  ;;  %v4457_v45 = vmax.f32 %v2155_v28, %v2204_v63 }
 0x60d   : > { %v3211_v39 = vpack.i.bf16 %v4457_v45, %v4455_v22 }
 0x60f   : > { %3212 = vrot.lane.b32.xlu1 %v3211_v39, %s3267_s10  ;;  %v3178_v42 = vpop.permute.xlu2 %3177 }
 0x610   : > { %v3180_v38 = vunpack.i.h.bf16 %v3178_v42  ;;  %v3179_v51 = vunpack.i.l.bf16 %v3178_v42 }
 0x612   : > { %v2193_v13 = vsel %vm549_vm1, %v3179_v51, %v3180_v38  ;;  %v2201_v16 = vsel %vm549_vm1, %v3180_v38, %v3179_v51 }
 0x613   : > { %v4466_v24 = vmax.f32 %v2148_v33, %v2193_v13  ;;  %v4468_v25 = vmax.f32 %v2149_v47, %v2201_v16 }
 0x615   : > { %v3216_v43 = vpack.i.bf16 %v4468_v25, %v4466_v24 }
 0x617   : > { %v3198_v27 = vpop.permute.xlu2 %3197  ;;  %3217 = vrot.lane.b32.xlu1 %v3216_v43, %s3267_s10 }
 0x618   : > { %v3163_v15 = vpop.permute.xlu1 %3162  ;;  %v3200_v36 = vunpack.i.h.bf16 %v3198_v27  ;;  %v3199_v49 = vunpack.i.l.bf16 %v3198_v27 }
 0x619   : > { %v3165_v28 = vunpack.i.h.bf16 %v3163_v15  ;;  %v3164_v29 = vunpack.i.l.bf16 %v3163_v15 }
 0x61a   : > { %v2190_v48 = vsel %vm549_vm1, %v3199_v49, %v3200_v36  ;;  %v2198_v34 = vsel %vm549_vm1, %v3200_v36, %v3199_v49 }
 0x61b   : > { %v2197_v55 = vsel %vm549_vm1, %v3164_v29, %v3165_v28  ;;  %v2205_v56 = vsel %vm549_vm1, %v3165_v28, %v3164_v29  ;;  %v4481_v61 = vmax.f32 %v2142_v8, %v2190_v48  ;;  %v4483_v62 = vmax.f32 %v2143_v9, %v2198_v34 }
 0x61c   : > { %v2220_v23 = vmax.f32 %v4353_v59, %v2197_v55  ;;  %v2221_v19 = vmax.f32 %v4355_v60, %v2205_v56  ;;  %v3183_v35 = vpop.permute.xlu0 %3182 }
 0x61d   : > { %v3185_v40 = vunpack.i.h.bf16 %v3183_v35  ;;  %v3184_v46 = vunpack.i.l.bf16 %v3183_v35  ;;  %v3236_v41 = vpack.i.bf16 %v4483_v62, %v4481_v61 }
 0x61e   : > { %v3201_v21 = vpack.i.bf16 %v2221_v19, %v2220_v23 }
 0x61f   : > { %v2195_v32 = vsel %vm549_vm1, %v3184_v46, %v3185_v40  ;;  %v2203_v20 = vsel %vm549_vm1, %v3185_v40, %v3184_v46  ;;  %3237 = vrot.lane.b32.xlu1 %v3236_v41, %s3267_s10 }
 0x620   : > { %v3168_v52 = vpop.permute.xlu1 %3167  ;;  %3202 = vrot.lane.b32.xlu0 %v3201_v21, %s3267_s10  ;;  %v4496_v59 = vmax.f32 %v4373_v18, %v2195_v32  ;;  %v4499_v60 = vmax.f32 %v4376_v6, %v2203_v20 }
 0x621   : > { %v3170_v37 = vunpack.i.h.bf16 %v3168_v52  ;;  %v3169_v30 = vunpack.i.l.bf16 %v3168_v52 }
 0x622   : > { %v3221_v47 = vpack.i.bf16 %v4499_v60, %v4496_v59 }
 0x623   : > { %v2194_v31 = vsel %vm549_vm1, %v3169_v30, %v3170_v37  ;;  %v2202_v33 = vsel %vm549_vm1, %v3170_v37, %v3169_v30 }
 0x624   : > { %v4508_v57 = vmax.f32 %v4386_v26, %v2194_v31  ;;  %v4511_v18 = vmax.f32 %v4388_v50, %v2202_v33  ;;  %3222 = vrot.lane.b32.xlu2 %v3221_v47, %s3267_s10 }
 0x625   : > { %v3188_v6 = vpop.permute.xlu0 %3187 }
 0x626   : > { %v3206_v58 = vpack.i.bf16 %v4511_v18, %v4508_v57  ;;  %v3190_v1 = vunpack.i.h.bf16 %v3188_v6  ;;  %v3189_v2 = vunpack.i.l.bf16 %v3188_v6 }
 0x628   : > { %v3193_v5 = vpop.permute.xlu1 %3192  ;;  %3207 = vrot.lane.b32.xlu0 %v3206_v58, %s3267_s10  ;;  %v2192_v14 = vsel %vm549_vm1, %v3189_v2, %v3190_v1  ;;  %v2200_v26 = vsel %vm549_vm1, %v3190_v1, %v3189_v2 }
 0x629   : > { %v3195_v7 = vunpack.i.h.bf16 %v3193_v5  ;;  %v3194_v50 = vunpack.i.l.bf16 %v3193_v5  ;;  %v4522_v8 = vmax.f32 %v4421_v44, %v2192_v14  ;;  %v4525_v9 = vmax.f32 %v4423_v53, %v2200_v26 }
 0x62b   : > { %v2191_v54 = vsel %vm549_vm1, %v3194_v50, %v3195_v7  ;;  %v2199_v11 = vsel %vm549_vm1, %v3195_v7, %v3194_v50  ;;  %v3226_v0 = vpack.i.bf16 %v4525_v9, %v4522_v8 }
 0x62c   : > { %v4532_v10 = vmax.f32 %v4431_v3, %v2191_v54  ;;  %v4535_v12 = vmax.f32 %v4433_v4, %v2199_v11  ;;  %v2287_v11 = vld [vmem:[%s4810_s3] sm:$0xff] }
 0x62d   : > { %3227 = vrot.lane.b32.xlu2 %v3226_v0, %s3267_s10  ;;  %v2292_v0 = vld [vmem:[%s4810_s3 + $0x28] sm:$0xff] }
 0x62e   : > { %v3231_v44 = vpack.i.bf16 %v4535_v12, %v4532_v10 }
 0x630   : > { %3232 = vrot.lane.b32.xlu0 %v3231_v44, %s3267_s10  ;;  %v2293_v44 = vld [vmem:[%s4810_s3 + $0x30] sm:$0xff] }
 0x67e   : > { %v3223_v63 = vpop.permute.xlu2 %3222 }
 0x67f   : > { %v3225_v38 = vunpack.i.h.bf16 %v3223_v63  ;;  %v3224_v4 = vunpack.i.l.bf16 %v3223_v63  ;;  %v2295_v63 = vld [vmem:[%s4810_s3 + $0x40] sm:$0xff] }
 0x681   : > { %v3213_v53 = vpop.permute.xlu1 %3212  ;;  %v2260_v29 = vsel %vm2254_vm4, %v3224_v4, %v3225_v38  ;;  %v2268_v48 = vsel %vm2254_vm4, %v3225_v38, %v3224_v4 }
 0x682   : > { %v3215_v39 = vunpack.i.h.bf16 %v3213_v53  ;;  %v3214_v42 = vunpack.i.l.bf16 %v3213_v53  ;;  %v2294_v53 = vld [vmem:[%s4810_s3 + $0x38] sm:$0xff] }
 0x684   : > { %v2261_v15 = vsel %vm2254_vm4, %v3214_v42, %v3215_v39  ;;  %v2269_v36 = vsel %vm2254_vm4, %v3215_v39, %v3214_v42  ;;  %v2296_v39 = vld [vmem:[%s4810_s3 + $0x48] sm:$0xff] }
 0x685   : > { %v2283_v55 = vmax.f32 %v4455_v22, %v2261_v15  ;;  %v2284_v56 = vmax.f32 %v4457_v45, %v2269_v36 }
 0x687   : > { %v3228_v34 = vpop.permute.xlu2 %3227 }
 0x688   : > { %v3230_v41 = vunpack.i.h.bf16 %v3228_v34  ;;  %v3229_v21 = vunpack.i.l.bf16 %v3228_v34 }
 0x689   : > { %v3218_v16 = vpop.permute.xlu1 %3217 }
 0x68a   : > { %v3220_v35 = vunpack.i.h.bf16 %v3218_v16  ;;  %v3219_v40 = vunpack.i.l.bf16 %v3218_v16  ;;  %v2257_v31 = vsel %vm2254_vm4, %v3229_v21, %v3230_v41  ;;  %v2265_v33 = vsel %vm2254_vm4, %v3230_v41, %v3229_v21  ;;  %v2521_v41 = vld [vmem:[%s4812_s5 + $0xf8] sm:$0xff]  ;;  %v2504_v21 = vld [vmem:[%s4812_s5 + $0x70] sm:$0xff] }
 0x68b   : > { %2557 = vmatpush.msra.mxu1 %v2521_v41 }
 0x68c   : > { %v2258_v52 = vsel %vm2254_vm4, %v3219_v40, %v3220_v35 }
 0x68d   : > { %v2277_v47 = vmax.f32 %v4466_v24, %v2258_v52  ;;  %v2518_v52 = vld [vmem:[%s4812_s5 + $0xe0] sm:$0xff] }
 0x691   : > { %v3238_v37 = vpop.permute.xlu1 %3237 }
 0x692   : > { %v3203_v3 = vpop.permute.xlu0 %3202  ;;  %v3240_v58 = vunpack.i.h.bf16 %v3238_v37  ;;  %v3239_v1 = vunpack.i.l.bf16 %v3238_v37  ;;  %v2517_v37 = vld [vmem:[%s4812_s5 + $0xd8] sm:$0xff] }
 0x693   : > { %v3205_v51 = vunpack.i.h.bf16 %v3203_v3  ;;  %v3204_v13 = vunpack.i.l.bf16 %v3203_v3 }
 0x694   : > { %v2263_v7 = vsel %vm2254_vm4, %v3240_v58, %v3239_v1 }
 0x695   : > { %v2262_v43 = vsel %vm2254_vm4, %v3204_v13, %v3205_v51  ;;  %v2270_v27 = vsel %vm2254_vm4, %v3205_v51, %v3204_v13  ;;  %v2272_v54 = vmax.f32 %v4483_v62, %v2263_v7  ;;  %v2290_v62 = vld [vmem:[%s4810_s3 + $0x18] sm:$0xff] }
 0x696   : > { %v2285_v49 = vmax.f32 %v2220_v23, %v2262_v43  ;;  %v2286_v28 = vmax.f32 %v2221_v19, %v2270_v27  ;;  %v2281_v23 = vmax.f32 %v4496_v59, %v2260_v29  ;;  %v2282_v19 = vmax.f32 %v4499_v60, %v2268_v48  ;;  %v2509_v7 = vld [vmem:[%s4812_s5 + $0x98] sm:$0xff] }
 0x697   : > { %v2266_v59 = vsel %vm2254_vm4, %v3220_v35, %v3219_v40 }
 0x698   : > { %2336 = vmatpush.msrb.mxu2 %v2285_v49  ;;  %2383 = vmatpush.msrb.mxu3 %v2286_v28  ;;  %v2278_v6 = vmax.f32 %v4468_v25, %v2266_v59  ;;  %v2255_v25 = vsel %vm2254_vm4, %v3239_v1, %v3240_v58  ;;  %v2501_v59 = vld [vmem:[%s4812_s5 + $0x58] sm:$0xff] }
 0x699   : > { %v2497_v58 = vld [vmem:[%s4812_s5 + $0x38] sm:$0xff] }
 0x69a   : > { %v3208_v46 = vpop.permute.xlu0 %3207  ;;  %2337 = vmatpush.msrb.mxu2 %v2283_v55  ;;  %2384 = vmatpush.msrb.mxu3 %v2284_v56  ;;  %v2513_v1 = vld [vmem:[%s4812_s5 + $0xb8] sm:$0xff] }
 0x69b   : > { %v3210_v32 = vunpack.i.h.bf16 %v3208_v46  ;;  %v3209_v20 = vunpack.i.l.bf16 %v3208_v46  ;;  %v2522_v46 = vld [vmem:[%s4811_s4] sm:$0xff] }
 0x69c   : > { %2338 = vmatpush.msrb.mxu2 %v2281_v23  ;;  %2385 = vmatpush.msrb.mxu3 %v2282_v19  ;;  %v2523_v23 = vld [vmem:[%s4811_s4 + $0x8] sm:$0xff]  ;;  %v2505_v19 = vld [vmem:[%s4812_s5 + $0x78] sm:$0xff] }
 0x69d   : > { %v2259_v22 = vsel %vm2254_vm4, %v3209_v20, %v3210_v32  ;;  %v2267_v45 = vsel %vm2254_vm4, %v3210_v32, %v3209_v20  ;;  %2534 = vmatpush.msra.mxu0 %v2505_v19  ;;  %v2520_v32 = vld [vmem:[%s4812_s5 + $0xf0] sm:$0xff]  ;;  %v2503_v20 = vld [vmem:[%s4812_s5 + $0x68] sm:$0xff] }
 0x69e   : > { %v2279_v60 = vmax.f32 %v4508_v57, %v2259_v22  ;;  %v2280_v30 = vmax.f32 %v4511_v18, %v2267_v45  ;;  %v2275_v57 = vmax.f32 %v4522_v8, %v2257_v31  ;;  %v2276_v18 = vmax.f32 %v4525_v9, %v2265_v33  ;;  %2558 = vmatpush.msra.mxu1 %v2520_v32  ;;  %v2519_v22 = vld [vmem:[%s4812_s5 + $0xe8] sm:$0xff]  ;;  %v2502_v45 = vld [vmem:[%s4812_s5 + $0x60] sm:$0xff] }
 0x69f   : > { %v2271_v9 = vmax.f32 %v4481_v61, %v2255_v25  ;;  %v2289_v61 = vld [vmem:[%s4810_s3 + $0x10] sm:$0xff]  ;;  %2535 = vmatpush.msra.mxu0 %v2504_v21  ;;  %v2499_v31 = vld [vmem:[%s4812_s5 + $0x48] sm:$0xff]  ;;  %v2493_v25 = vld [vmem:[%s4812_s5 + $0x18] sm:$0xff] }
 0x6a0   : > { %2339 = vmatpush.msrb.mxu2 %v2279_v60  ;;  %2386 = vmatpush.msrb.mxu3 %v2280_v30  ;;  %v2500_v60 = vld [vmem:[%s4812_s5 + $0x50] sm:$0xff]  ;;  %v2515_v33 = vld [vmem:[%s4812_s5 + $0xc8] sm:$0xff] }
 0x6a1   : > { %2536 = vmatpush.msra.mxu0 %v2503_v20  ;;  %2559 = vmatpush.msra.mxu1 %v2519_v22  ;;  %v2516_v30 = vld [vmem:[%s4812_s5 + $0xd0] sm:$0xff] }
 0x6a2   : > { %v3233_v2 = vpop.permute.xlu0 %3232  ;;  %2340 = vmatpush.msrb.mxu2 %v2277_v47  ;;  %2387 = vmatpush.msrb.mxu3 %v2278_v6  ;;  %v2498_v47 = vld [vmem:[%s4812_s5 + $0x40] sm:$0xff] }
 0x6a3   : > { %v3235_v5 = vunpack.i.h.bf16 %v3233_v2  ;;  %v3234_v14 = vunpack.i.l.bf16 %v3233_v2  ;;  %2537 = vmatpush.msra.mxu0 %v2502_v45  ;;  %2560 = vmatpush.msra.mxu1 %v2518_v52  ;;  %v2514_v6 = vld [vmem:[%s4812_s5 + $0xc0] sm:$0xff]  ;;  %v2496_v2 = vld [vmem:[%s4812_s5 + $0x30] sm:$0xff] }
 0x6a4   : > { %2341 = vmatpush.msrb.mxu2 %v2275_v57  ;;  %2388 = vmatpush.msrb.mxu3 %v2276_v18  ;;  %v2512_v57 = vld [vmem:[%s4812_s5 + $0xb0] sm:$0xff] }
 0x6a5   : > { %v2256_v26 = vsel %vm2254_vm4, %v3234_v14, %v3235_v5  ;;  %v2264_v24 = vsel %vm2254_vm4, %v3235_v5, %v3234_v14  ;;  %2538 = vmatpush.msra.mxu0 %v2501_v59  ;;  %2561 = vmatpush.msra.mxu1 %v2517_v37  ;;  %v2495_v5 = vld [vmem:[%s4812_s5 + $0x28] sm:$0xff] }
 0x6a6   : > { %v2273_v50 = vmax.f32 %v4532_v10, %v2256_v26  ;;  %v2274_v8 = vmax.f32 %v4535_v12, %v2264_v24  ;;  %v2288_v10 = vld [vmem:[%s4810_s3 + $0x8] sm:$0xff]  ;;  %v2291_v12 = vld [vmem:[%s4810_s3 + $0x20] sm:$0xff] }
 0x6a7   : > { %2539 = vmatpush.msra.mxu0 %v2500_v60  ;;  %2562 = vmatpush.msra.mxu1 %v2516_v30  ;;  %v2511_v14 = vld [vmem:[%s4812_s5 + $0xa8] sm:$0xff]  ;;  %v2494_v26 = vld [vmem:[%s4812_s5 + $0x20] sm:$0xff] }
 0x6a8   : > { %2342 = vmatpush.msrb.mxu2 %v2273_v50  ;;  %2389 = vmatpush.msrb.mxu3 %v2274_v8  ;;  %v2510_v24 = vld [vmem:[%s4812_s5 + $0xa0] sm:$0xff]  ;;  %v2492_v50 = vld [vmem:[%s4812_s5 + $0x10] sm:$0xff] }
 0x6a9   : > { %2540 = vmatpush.msra.mxu0 %v2499_v31  ;;  %2563 = vmatpush.msra.mxu1 %v2515_v33  ;;  %v2508_v8 = vld [vmem:[%s4812_s5 + $0x90] sm:$0xff] }
 0x6aa   : > { %2343 = vmatpush.msrb.mxu2 %v2271_v9  ;;  %2390 = vmatpush.msrb.mxu3 %v2272_v54  ;;  %v2491_v54 = vld [vmem:[%s4812_s5 + $0x8] sm:$0xff] }
 0x6ab   : > { %3045 = vmatmul.msk.f32.vlgmr.msrb.gmra.mxu2 %vm2297_vm5, %v2287_v11  ;;  %3055 = vmatmul.msk.f32.vlgmr.msrb.gmra.mxu3 %vm2297_vm5, %v2287_v11  ;;  %v2507_v11 = vld [vmem:[%s4812_s5 + $0x88] sm:$0xff] }
 0x6ac   : > { %2541 = vmatpush.msra.mxu0 %v2498_v47  ;;  %2564 = vmatpush.msra.mxu1 %v2514_v6 }
 0x6ae   : > { %2542 = vmatpush.msra.mxu0 %v2497_v58  ;;  %2565 = vmatpush.msra.mxu1 %v2513_v1 }
 0x6b0   : > { %2543 = vmatpush.msra.mxu0 %v2496_v2  ;;  %2566 = vmatpush.msra.mxu1 %v2512_v57 }
 0x6b2   : > { %2544 = vmatpush.msra.mxu0 %v2495_v5  ;;  %2567 = vmatpush.msra.mxu1 %v2511_v14 }
 0x6b3   : > { %3046 = vmatmul.msk.f32.gmra.mxu2 %vm2297_vm5, %v2288_v10  ;;  %3056 = vmatmul.msk.f32.gmra.mxu3 %vm2297_vm5, %v2288_v10  ;;  %v2490_v10 = vld [vmem:[%s4812_s5] sm:$0xff] }
 0x6b4   : > { %2545 = vmatpush.msra.mxu0 %v2494_v26  ;;  %2568 = vmatpush.msra.mxu1 %v2510_v24 }
 0x6b6   : > { %2546 = vmatpush.msra.mxu0 %v2493_v25  ;;  %2569 = vmatpush.msra.mxu1 %v2509_v7 }
 0x6b8   : > { %2547 = vmatpush.msra.mxu0 %v2492_v50  ;;  %2570 = vmatpush.msra.mxu1 %v2508_v8 }
 0x6ba   : > { %2548 = vmatpush.msra.mxu0 %v2491_v54  ;;  %2571 = vmatpush.msra.mxu1 %v2507_v11 }
 0x6bb   : > { %3047 = vmatmul.msk.f32.gmra.mxu2 %vm2297_vm5, %v2289_v61  ;;  %3057 = vmatmul.msk.f32.gmra.mxu3 %vm2297_vm5, %v2289_v61  ;;  %v2506_v61 = vld [vmem:[%s4812_s5 + $0x80] sm:$0xff] }
 0x6bc   : > { %2549 = vmatpush.msra.mxu0 %v2490_v10  ;;  %2572 = vmatpush.msra.mxu1 %v2506_v61 }
 0x6c3   : > { %3048 = vmatmul.msk.f32.gmra.mxu2 %vm2297_vm5, %v2290_v62  ;;  %3058 = vmatmul.msk.f32.gmra.mxu3 %vm2297_vm5, %v2290_v62 }
 0x6cb   : > { %3049 = vmatmul.msk.f32.gmra.mxu2 %vm2297_vm5, %v2291_v12  ;;  %3059 = vmatmul.msk.f32.gmra.mxu3 %vm2297_vm5, %v2291_v12 }
 0x6d3   : > { %3050 = vmatmul.msk.f32.gmra.mxu2 %vm2297_vm5, %v2292_v0  ;;  %3060 = vmatmul.msk.f32.gmra.mxu3 %vm2297_vm5, %v2292_v0 }
 0x6db   : > { %3051 = vmatmul.msk.f32.gmra.mxu2 %vm2297_vm5, %v2293_v44  ;;  %3061 = vmatmul.msk.f32.gmra.mxu3 %vm2297_vm5, %v2293_v44 }
 0x6e3   : > { %3052 = vmatmul.msk.f32.gmra.mxu2 %vm2297_vm5, %v2294_v53  ;;  %3062 = vmatmul.msk.f32.gmra.mxu3 %vm2297_vm5, %v2294_v53 }
 0x6eb   : > { %3053 = vmatmul.msk.f32.gmra.mxu2 %vm2297_vm5, %v2295_v63  ;;  %3063 = vmatmul.msk.f32.gmra.mxu3 %vm2297_vm5, %v2295_v63 }
 0x6f3   : > { %3054 = vmatmul.msk.f32.gmra.mxu2 %vm2297_vm5, %v2296_v39  ;;  %3064 = vmatmul.msk.f32.gmra.mxu3 %vm2297_vm5, %v2296_v39 }
 0x72e   : > { %v4640_v42 = vpop.f32.mrf.mxu2  ;;  %v4642_v3 = vpop.f32.mrf.mxu3 }
 0x736   : > { %v4644_v38 = vpop.f32.mrf.mxu2  ;;  %v4646_v4 = vpop.f32.mrf.mxu3 }
 0x73e   : > { %v2351_v51 = vpop.f32.mrf.mxu2  ;;  %v2398_v13 = vpop.f32.mrf.mxu3 }
 0x73f   : > { %2426 = vrot.lane.b32.xlu0 %v2398_v13, %s3268_s11  ;;  %2422 = vrot.lane.b32.xlu2 %v2351_v51, %s3268_s11 }
 0x746   : > { %v2354_v16 = vpop.f32.mrf.mxu2  ;;  %v2401_v43 = vpop.f32.mrf.mxu3 }
 0x747   : > { %2424 = vrot.lane.b32.xlu1 %v2354_v16, %s3268_s11  ;;  %2428 = vrot.lane.b32.xlu2 %v2401_v43, %s3268_s11 }
 0x74e   : > { %v2357_v27 = vpop.f32.mrf.mxu2  ;;  %v2404_v15 = vpop.f32.mrf.mxu3 }
 0x74f   : > { %2439 = vrot.lane.b32.xlu1 %v2357_v27, %s3269_s12  ;;  %2443 = vrot.lane.b32.xlu2 %v2404_v15, %s3269_s12 }
 0x756   : > { %v2360_v36 = vpop.f32.mrf.mxu2  ;;  %v2407_v49 = vpop.f32.mrf.mxu3 }
 0x757   : > { %2441 = vrot.lane.b32.xlu0 %v2360_v36, %s3269_s12 }
 0x75e   : > { %v2363_v28 = vpop.f32.mrf.mxu2  ;;  %v2410_v29 = vpop.f32.mrf.mxu3 }
 0x75f   : > { %2460 = vrot.lane.b32.xlu1 %v2410_v29, %s3270_s13  ;;  %2456 = vrot.lane.b32.xlu0 %v2363_v28, %s3270_s13 }
 0x766   : > { %v2366_v48 = vpop.f32.mrf.mxu2  ;;  %v2413_v34 = vpop.f32.mrf.mxu3 }
 0x767   : > { %2445 = vrot.lane.b32.xlu1 %v2407_v49, %s3269_s12  ;;  %2458 = vrot.lane.b32.xlu2 %v2366_v48, %s3270_s13 }
 0x76e   : > { %v2369_v55 = vpop.f32.mrf.mxu2  ;;  %v2416_v56 = vpop.f32.mrf.mxu3 }
 0x76f   : > { %2477 = vrot.lane.b32.xlu0 %v2416_v56, %s3271_s15  ;;  %2473 = vrot.lane.b32.xlu2 %v2369_v55, %s3271_s15 }
 0x776   : > { %v2372_v35 = vpop.f32.mrf.mxu2  ;;  %v2419_v40 = vpop.f32.mrf.mxu3 }
 0x777   : > { %2462 = vrot.lane.b32.xlu0 %v2413_v34, %s3270_s13  ;;  %2475 = vrot.lane.b32.xlu1 %v2372_v35, %s3271_s15 }
 0x778   : > { %2479 = vrot.lane.b32.xlu2 %v2419_v40, %s3271_s15 }
 0x77f   : > { %2526 = vperm.xlu0 %3159, %v2522_v46   ;;  %2531 = vperm.xlu1 %3160, %v2523_v23  }
 0x799   : > { %v2423_v18 = vpop.permute.xlu2 %2422 }
 0x7a1   : > { %v2429_v9 = vpop.permute.xlu2 %2428 }
 0x7a9   : > { %v2444_v0 = vpop.permute.xlu2 %2443 }
 0x7b1   : > { %v2427_v12 = vpop.permute.xlu0 %2426 }
 0x7b2   : > { %v2431_v13 = vsel %vm2430_vm6, %v2423_v18, %v2427_v12  ;;  %v2433_v16 = vsel %vm2430_vm6, %v2427_v12, %v2423_v18 }
 0x7b3   : > { %v2435_v15 = vadd.f32 %v2431_v13, %v4640_v42  ;;  %v2436_v36 = vadd.f32 %v2433_v16, %v4642_v3 }
 0x7b9   : > { %v2425_v62 = vpop.permute.xlu1 %2424 }
 0x7ba   : > { %v2432_v19 = vsel %vm2430_vm6, %v2425_v62, %v2429_v9  ;;  %v2434_v41 = vsel %vm2430_vm6, %v2429_v9, %v2425_v62 }
 0x7bb   : > { %v2437_v20 = vadd.f32 %v2432_v19, %v4644_v38  ;;  %v2438_v22 = vadd.f32 %v2434_v41, %v4646_v4 }
 0x7c1   : > { %v2440_v44 = vpop.permute.xlu1 %2439  ;;  %v2459_v63 = vpop.permute.xlu2 %2458 }
 0x7c2   : > { %v2448_v43 = vsel %vm2447_vm7, %v2440_v44, %v2444_v0  ;;  %v2450_v27 = vsel %vm2447_vm7, %v2444_v0, %v2440_v44 }
 0x7c3   : > { %v2452_v29 = vadd.f32 %v2448_v43, %v2435_v15  ;;  %v2453_v48 = vadd.f32 %v2450_v27, %v2436_v36 }
 0x7c9   : > { %v2442_v53 = vpop.permute.xlu0 %2441  ;;  %v2474_v34 = vpop.permute.xlu2 %2473 }
 0x7d1   : > { %v2461_v39 = vpop.permute.xlu1 %2460  ;;  %v2457_v51 = vpop.permute.xlu0 %2456 }
 0x7d2   : > { %v2465_v49 = vsel %vm2464_vm8, %v2457_v51, %v2461_v39  ;;  %v2467_v28 = vsel %vm2464_vm8, %v2461_v39, %v2457_v51  ;;  %v2480_v45 = vpop.permute.xlu2 %2479 }
 0x7d3   : > { %v2469_v55 = vadd.f32 %v2465_v49, %v2452_v29  ;;  %v2470_v56 = vadd.f32 %v2467_v28, %v2453_v48 }
 0x7d9   : > { %v2446_v35 = vpop.permute.xlu1 %2445 }
 0x7da   : > { %v2449_v21 = vsel %vm2447_vm7, %v2442_v53, %v2446_v35  ;;  %v2451_v32 = vsel %vm2447_vm7, %v2446_v35, %v2442_v53 }
 0x7db   : > { %v2454_v52 = vadd.f32 %v2449_v21, %v2437_v20  ;;  %v2455_v59 = vadd.f32 %v2451_v32, %v2438_v22 }
 0x7e1   : > { %v2478_v40 = vpop.permute.xlu0 %2477 }
 0x7e2   : > { %v2482_v42 = vsel %vm2481_vm9, %v2474_v34, %v2478_v40  ;;  %v2484_v3 = vsel %vm2481_vm9, %v2478_v40, %v2474_v34 }
 0x7e3   : > { %v2486_v46 = vadd.f32 %v2482_v42, %v2469_v55  ;;  %v2487_v23 = vadd.f32 %v2484_v3, %v2470_v56 }
 0x7e5   : > { %2550 = vmatmul.f32.vlgmr.msra.gmra.mxu0 %v2486_v46  ;;  %2573 = vmatmul.f32.vlgmr.msra.gmra.mxu1 %v2487_v23 }
 0x7e9   : > { %v2463_v37 = vpop.permute.xlu0 %2462  ;;  %v2476_v60 = vpop.permute.xlu1 %2475 }
 0x7ea   : > { %v2466_v30 = vsel %vm2464_vm8, %v2459_v63, %v2463_v37  ;;  %v2468_v31 = vsel %vm2464_vm8, %v2463_v37, %v2459_v63  ;;  %v2483_v33 = vsel %vm2481_vm9, %v2476_v60, %v2480_v45  ;;  %v2485_v38 = vsel %vm2481_vm9, %v2480_v45, %v2476_v60 }
 0x7eb   : > { %v2471_v4 = vadd.f32 %v2466_v30, %v2454_v52  ;;  %v2472_v47 = vadd.f32 %v2468_v31, %v2455_v59 }
 0x7ed   : > { %v2488_v6 = vadd.f32 %v2483_v33, %v2471_v4  ;;  %v2489_v58 = vadd.f32 %v2485_v38, %v2472_v47 }
 0x7ef   : > { %2553 = vmatmul.f32.gmra.mxu0 %v2488_v6  ;;  %2576 = vmatmul.f32.gmra.mxu1 %v2489_v58 }
 0x7f1   : > { %v2527_v1 = vpop.permute.xlu0 %2526  ;;  %v2532_v5 = vpop.permute.xlu1 %2531 }
 0x862   : > { %v2551_v2 = vpop.f32.mrf.mxu0  ;;  %v2574_v17 = vpop.f32.mrf.mxu1 }
 0x863   : > { %v2552_v57 = vadd.f32 %v2551_v2, %v2527_v1 }
 0x865   : > { %v2575_v18 = vadd.f32 %v2574_v17, %v2552_v57 }
 0x867   : > { %2581 = vst.msk [vmem:[%s332_s14] sm:$0xff] %vm2580_vm10, %v2575_v18 }
 0x86c   : > { %v2554_v14 = vpop.f32.mrf.mxu0  ;;  %v2577_v24 = vpop.f32.mrf.mxu1 }
 0x86d   : > { %v2555_v26 = vadd.f32 %v2554_v14, %v2532_v5 }
 0x86f   : > { %v2578_v25 = vadd.f32 %v2577_v24, %v2555_v26 }
 0x871   : > { %2582 = vst.msk [vmem:[%s332_s14 + $0x8] sm:$0xff] %vm2580_vm10, %v2578_v25 }
 0x872 PF: > { %p13_p9 = scmp.ge.s32.totalorder %s3324_s25, 4   ;;  %s4814_s21 = smov %s3259_s22 }
 0x873   : > { %s4815_s22 = smov %s3333_s28  ;;  %s4816_s23 = smov %s3324_s25 }
 0x874   :  { %15 = sbr.rel (!%p13_p9) target bundleno = 2 (0x2), region = 127 }

</bundles_post_ra>
